<compile_context>
chip_gen: v7x
topology: tpu7x:2x2x1
jax: 0.10.0
libtpu: 0.0.40
codegen_flags: <defaults>
</compile_context>

<pallas_src>
import math
from functools import partial

import jax
import jax.numpy as jnp
from jax.experimental import pallas as pl
from jax.experimental.pallas import tpu as pltpu

LANES = 128   # every packed weight block / activation slab is 128 lanes wide


# ----------------------------------------------------------------------------- the kernel
def uptriangle1_kernel(x_ref, ctx_ref, ctxT_ref, w_ref, b_ref, out_ref,
                       *, fin, fout, s, ln_eps):
    f32, bf16 = jnp.float32, jnp.bfloat16

    x00 = x_ref[...]                     # (TB, 128)    f32, lanes >= fin are zero
    ctx = ctx_ref[...]                   # (TB*S, 128)  bf16, lanes >= fin are zero
    ctxT = ctxT_ref[...]                 # (128, TB*S)  bf16, rows  >= fin are zero

    def w(i):                            # static, tile-aligned (128,128) view of the weight slab
        return w_ref[i * LANES:(i + 1) * LANES, :]

    def b(i):                            # (1,128) bias row, broadcasts over the batch tile
        return b_ref[i:i + 1, :]

    def mm(a, i):                        # (TB,128) @ weight block i -> (TB,128) f32 on the MXU
        return jnp.dot(a.astype(bf16), w(i), preferred_element_type=f32)

    def aoa_block(xin_f32, wi0, bi0):
        """Attention-on-Attention block (assumed TransAoA internals, see header note).

        Everything stays (TB,128) / (TB,TB*S) lane-dense; zero-padded lanes stay exactly
        zero because the packed weights / biases are zero-padded.
        """
        xin = xin_f32.astype(bf16)
        q = mm(xin, wi0 + 0) + b(bi0 + 0)                    # query (with bias)
        # scores_pre = q @ (Wk^T / sqrt(d)); Wq@Wk^T*scale is pre-fused offline into one
        # block (the k bias cancels exactly inside the softmax, so it is dropped).
        sc_pre = mm(xin, wi0 + 1) + b(bi0 + 1)               # (TB,128), real lanes [0:fin)
        scores = jnp.dot(sc_pre.astype(bf16), ctxT,
                         preferred_element_type=f32)         # (TB, TB*S), lane-dense
        # block-diagonal mask: batch row r may only attend to its own S ctx rows
        col = jax.lax.broadcasted_iota(jnp.int32, scores.shape, 1)
        row = jax.lax.broadcasted_iota(jnp.int32, scores.shape, 0)
        valid = (col >= row * s) & (col < (row + 1) * s)
        scores = jnp.where(valid, scores, -1e30)
        scores = scores - jnp.max(scores, axis=-1, keepdims=True)
        p = jnp.exp(scores)
        p = p * pl.reciprocal(jnp.sum(p, axis=-1, keepdims=True), approx=True)
        # attended = (P @ ctx) @ Wv + bv   (rows of P sum to 1 -> bv hoisted out exactly)
        pc = jnp.dot(p.astype(bf16), ctx, preferred_element_type=f32)   # (TB,128)
        att = mm(pc, wi0 + 2) + b(bi0 + 2)
        # AoA head over concat([q, attended]) split into sums of dots (no lane concat)
        info = mm(q, wi0 + 3) + mm(att, wi0 + 4) + b(bi0 + 3)
        gate = mm(q, wi0 + 5) + mm(att, wi0 + 6) + b(bi0 + 4)
        return info * jax.nn.sigmoid(gate)                   # padded lanes: 0 * 0.5 = 0

    # ---- x_10 = self.up(x_00, ctx) ------------------------------------------------------
    x10 = aoa_block(x00, 0, 0)                               # real lanes [0:fout)

    # ---- x_mid = relu(layernorm(mid_linear(cat([x_00, x_10])))) (dropout = identity) -----
    xm = mm(x00, 7) + mm(x10, 8) + b(5)                      # (TB,128), lanes >= fin are zero
    mu = jnp.sum(xm, axis=-1, keepdims=True) * (1.0 / fin)   # zero padding -> sums are exact
    var = jnp.sum(xm * xm, axis=-1, keepdims=True) * (1.0 / fin) - mu * mu
    xm = (xm - mu) * jax.lax.rsqrt(var + ln_eps)
    xm = xm * b(6) + b(7)                                    # gamma/beta zero-padded -> pad lanes back to 0
    xm = jnp.maximum(xm, 0.0)
    # TODO(synk): training-mode dropout (Bernoulli mask + 1/(1-p) scale) not implemented.

    # ---- mid_attention(xm, xm, xm) with seq_len == 1: softmax over a single key is exactly
    #      1, so the output equals out_proj(V(xm)); block 9 is the offline-fused (Wv @ Wo).
    x_att = mm(xm, 9) + b(8)

    # ---- x_01 = final_transform(x_att + x_00, ctx) ----------------------------------------
    # The final head's packed weights are column-shifted by `fout`, so x01 is born in lanes
    # [fout : fout+fin) and the packed output is a single add (no roll / concat / slice).
    x01 = aoa_block(x_att + x00, 10, 9)

    out_ref[...] = x10 + x01                                 # [x10 | x01 | zero pad]


# ----------------------------------------------------------------------------- wrapper (glue)
def uptriangle1(x, ctx, packed, fin, fout):
    B = x.shape[0]
    S = ctx.shape[1]
    assert fin <= LANES and fout <= LANES and fin + fout <= LANES, \
        "single 128-lane output slab requires fin + fout <= 128"
    assert B % 8 == 0, "batch must be a multiple of 8 sublanes"

    # lane-pad + pre-cast the activations in XLA: nothing 3-D enters the kernel and ctx
    # (the largest activation) is DMA'd as bf16, both natural and pre-transposed.
    x_pad = jnp.pad(x, ((0, 0), (0, LANES - fin)))
    ctx2 = ctx.reshape(B * S, fin)
    ctx_pad = jnp.pad(ctx2, ((0, 0), (0, LANES - fin))).astype(jnp.bfloat16)
    ctxT_pad = jnp.pad(ctx2.T, ((0, LANES - fin), (0, 0))).astype(jnp.bfloat16)

    # Single grid step for small batches (per-step pipeline overhead dominates there);
    # 2-way "parallel" batch grid only when B is large enough and tiles stay (8,128)-aligned.
    nsteps = 2 if (B >= 64 and B % 16 == 0 and ((B // 2) * S) % LANES == 0) else 1
    tb = B // nsteps

    w_slab = packed["w_slab"]
    b_slab = packed["b_slab"]

    kernel = partial(uptriangle1_kernel, fin=fin, fout=fout, s=S, ln_eps=1e-5)

    out = pl.pallas_call(
        kernel,
        grid=(nsteps,),
        out_shape=jax.ShapeDtypeStruct((B, LANES), jnp.float32),
        in_specs=[
            pl.BlockSpec((tb, LANES), lambda i: (i, 0)),        # x      (batch tile)
            pl.BlockSpec((tb * S, LANES), lambda i: (i, 0)),    # ctx    (rows of this tile)
            pl.BlockSpec((LANES, tb * S), lambda i: (0, i)),    # ctx^T  (cols of this tile)
            pl.BlockSpec(w_slab.shape, lambda i: (0, 0)),       # packed weights (grid-invariant)
            pl.BlockSpec(b_slab.shape, lambda i: (0, 0)),       # packed biases  (grid-invariant)
        ],
        out_specs=pl.BlockSpec((tb, LANES), lambda i: (i, 0)),
        compiler_params=pltpu.CompilerParams(dimension_semantics=("parallel",)),
    )(x_pad, ctx_pad, ctxT_pad, w_slab, b_slab)

    return out[:, :fout], out[:, fout:fout + fin]


# ----------------------------------------------------------------------------- param packing
def pack_params(params, fin, fout):
    """Collapse all module weights into one bf16 slab of (128,128) blocks + one f32 bias slab."""
    up, ft, mha = params["up"], params["final"], params["mha"]
    ml_w, ml_b = params["mid_linear"]
    ln_g, ln_b = params["ln"]

    def blk(m, col_off=0):                 # place a (r,c) matrix into a zero (128,128) block
        r, c = m.shape
        return jnp.zeros((LANES, LANES), jnp.float32).at[:r, col_off:col_off + c].set(m)

    def brow(v, col_off=0):                # place a vector into a zero (128,) bias row
        v = v.reshape(-1)
        return jnp.zeros((LANES,), jnp.float32).at[col_off:col_off + v.shape[0]].set(v)

    u_sc = 1.0 / math.sqrt(fout)
    f_sc = 1.0 / math.sqrt(fin)

    # seq_len==1 nn.MultiheadAttention: output == out_proj(V(x)) -> fuse the two linears exactly.
    w_mha = mha["wv"] @ mha["wo"]
    b_mha = mha["bv"] @ mha["wo"] + mha["bo"]

    blocks = [
        blk(up["wq"]),                                 # 0  W_UQ
        blk((up["wq"] @ up["wk"].T) * u_sc),           # 1  W_USC  (x -> attention scores, scale folded)
        blk(up["wv"]),                                 # 2  W_UV
        blk(up["wi"][:fout, :]),                       # 3  W_UI_Q
        blk(up["wi"][fout:, :]),                       # 4  W_UI_A
        blk(up["wg"][:fout, :]),                       # 5  W_UG_Q
        blk(up["wg"][fout:, :]),                       # 6  W_UG_A
        blk(ml_w[:fin, :]),                            # 7  W_MID_X  (mid_linear rows for x00)
        blk(ml_w[fin:, :]),                            # 8  W_MID_U  (mid_linear rows for x10)
        blk(w_mha),                                    # 9  W_MHA    (Wv @ Wo fused)
        blk(ft["wq"]),                                 # 10 W_FQ
        blk((ft["wq"] @ ft["wk"].T) * f_sc),           # 11 W_FSC
        blk(ft["wv"]),                                 # 12 W_FV
        blk(ft["wi"][:fin, :], col_off=fout),          # 13 W_FI_Q  (column-shifted: x01 lands at
        blk(ft["wi"][fin:, :], col_off=fout),          # 14 W_FI_A   lanes [fout:fout+fin))
        blk(ft["wg"][:fin, :], col_off=fout),          # 15 W_FG_Q
        blk(ft["wg"][fin:, :], col_off=fout),          # 16 W_FG_A
    ]
    w_slab = jnp.concatenate(blocks, axis=0).astype(jnp.bfloat16)     # (17*128, 128) bf16

    rows = [
        brow(up["bq"]),                                # 0  u_bq
        brow((up["bq"] @ up["wk"].T) * u_sc),          # 1  fused score bias
        brow(up["bv"]),                                # 2  u_bv
        brow(up["bi"]),                                # 3  u_bi
        brow(up["bg"]),                                # 4  u_bg
        brow(ml_b),                                    # 5  mid_linear bias
        brow(ln_g),                                    # 6  LN gamma (zero-padded -> cleans pad lanes)
        brow(ln_b),                                    # 7  LN beta
        brow(b_mha),                                   # 8  fused MHA bias
        brow(ft["bq"]),                                # 9  f_bq
        brow((ft["bq"] @ ft["wk"].T) * f_sc),          # 10 fused score bias
        brow(ft["bv"]),                                # 11 f_bv
        brow(ft["bi"], col_off=fout),                  # 12 f_bi (shifted with W_FI_*)
        brow(ft["bg"], col_off=fout),                  # 13 f_bg (shifted with W_FG_*)
    ]
    rows += [jnp.zeros((LANES,), jnp.float32)] * ((-len(rows)) % 8)   # pad to 8-sublane multiple
    b_slab = jnp.stack(rows).astype(jnp.float32)                      # (16, 128) f32

    return dict(w_slab=w_slab, b_slab=b_slab)


# ----------------------------------------------------------------------------- deterministic init
def _linear(key, din, dout, scale=0.05):
    """PyTorch nn.Linear(din, dout): weight (dout, din), bias (dout,).
    Returned in kernel layout: W (din, dout), b (1, dout)."""
    kw, kb = jax.random.split(key)
    w = scale * jax.random.normal(kw, (dout, din), jnp.float32)
    b = scale * jax.random.normal(kb, (dout,), jnp.float32)
    return w.T, b.reshape(1, dout)


def init_trans_aoa(key, din, dout):
    ks = jax.random.split(key, 5)
    wq, bq = _linear(ks[0], din, dout)
    wk, bk = _linear(ks[1], din, dout)    # bk cancels inside the softmax (kept for fidelity)
    wv, bv = _linear(ks[2], din, dout)
    wi, bi = _linear(ks[3], 2 * dout, dout)   # AoA "information" head over concat([q, attended])
    wg, bg = _linear(ks[4], 2 * dout, dout)   # AoA "gate" head
    return dict(wq=wq, bq=bq, wk=wk, bk=bk, wv=wv, bv=bv, wi=wi, bi=bi, wg=wg, bg=bg)


def init_mha(key, embed, scale=0.05):
    """nn.MultiheadAttention(embed, 4): for seq_len == 1 only the V slice and out_proj matter
    (softmax over a single key is exactly 1)."""
    k1, k2, k3 = jax.random.split(key, 3)
    in_proj_w = scale * jax.random.normal(k1, (3 * embed, embed), jnp.float32)
    in_proj_b = scale * jax.random.normal(k2, (3 * embed,), jnp.float32)
    wo, bo = _linear(k3, embed, embed)
    wv = in_proj_w[2 * embed:].T                     # (E, E) kernel layout
    bv = in_proj_b[2 * embed:].reshape(1, embed)
    return dict(wv=wv, bv=bv, wo=wo, bo=bo)


# ----------------------------------------------------------------------------- main
if __name__ == "__main__":
    B, FIN, FOUT, S = 16, 32, 64, 8   # in_features=32, out_features=64, ctx seq len 8

    key = jax.random.PRNGKey(0)
    k_x, k_ctx, k_up, k_ml, k_mha, k_ft = jax.random.split(key, 6)

    x = jax.random.normal(k_x, (B, FIN), jnp.float32)
    ctx = jax.random.normal(k_ctx, (B, S, FIN), jnp.float32)

    params = {
        "up": init_trans_aoa(k_up, FIN, FOUT),
        "mid_linear": _linear(k_ml, FIN + FOUT, FIN),
        "ln": (jnp.ones((1, FIN), jnp.float32), jnp.zeros((1, FIN), jnp.float32)),
        "mha": init_mha(k_mha, FIN),
        "final": init_trans_aoa(k_ft, FIN, FIN),
    }
    packed = pack_params(params, FIN, FOUT)

    x10, x01 = uptriangle1(x, ctx, packed, FIN, FOUT)
    jax.block_until_ready((x10, x01))

    assert x10.shape == (B, FOUT) and x10.dtype == jnp.float32
    assert x01.shape == (B, FIN) and x01.dtype == jnp.float32
    assert bool(jnp.all(jnp.isfinite(x10))) and bool(jnp.all(jnp.isfinite(x01)))
    print("KERNEL_OK")
</pallas_src>

<mosaic_0001>
module attributes {stable_mosaic.version = 11 : i64} {
  func.func @uptriangle1_kernel(%arg0: i32, %arg1: memref<16x128xf32, #tpu.memory_space<vmem>>, %arg2: memref<128x128xbf16, #tpu.memory_space<vmem>>, %arg3: memref<128x128xbf16, #tpu.memory_space<vmem>>, %arg4: memref<2176x128xbf16, #tpu.memory_space<vmem>>, %arg5: memref<16x128xf32, #tpu.memory_space<vmem>>, %arg6: memref<16x128xf32, #tpu.memory_space<vmem>>) attributes {dimension_semantics = [#tpu.dimension_semantics<parallel>], iteration_bounds = array<i64: 1>, scalar_prefetch = 0 : i64, scratch_operands = 0 : i64, tpu.core_type = #tpu.core_type<tc>, window_params = [{transform_indices = @transform_0, window_bounds = array<i64: 16, 128>}, {transform_indices = @transform_1, window_bounds = array<i64: 128, 128>}, {transform_indices = @transform_2, window_bounds = array<i64: 128, 128>}, {pipeline_mode = #tpu.pipeline_mode<synchronous>, transform_indices = @transform_3, window_bounds = array<i64: 2176, 128>}, {pipeline_mode = #tpu.pipeline_mode<synchronous>, transform_indices = @transform_4, window_bounds = array<i64: 16, 128>}, {transform_indices = @transform_5, window_bounds = array<i64: 16, 128>}]} {
    %c0 = arith.constant 0 : index
    %c0_0 = arith.constant 0 : index
    %0 = vector.load %arg1[%c0, %c0_0] : memref<16x128xf32, #tpu.memory_space<vmem>>, vector<16x128xf32>
    %c0_1 = arith.constant 0 : index
    %c0_2 = arith.constant 0 : index
    %1 = vector.load %arg2[%c0_1, %c0_2] : memref<128x128xbf16, #tpu.memory_space<vmem>>, vector<128x128xbf16>
    %c0_3 = arith.constant 0 : index
    %c0_4 = arith.constant 0 : index
    %2 = vector.load %arg3[%c0_3, %c0_4] : memref<128x128xbf16, #tpu.memory_space<vmem>>, vector<128x128xbf16>
    %3 = arith.truncf %0 : vector<16x128xf32> to vector<16x128xbf16>
    %c0_5 = arith.constant 0 : index
    %c0_6 = arith.constant 0 : index
    %4 = vector.load %arg4[%c0_5, %c0_6] : memref<2176x128xbf16, #tpu.memory_space<vmem>>, vector<128x128xbf16>
    %cst = arith.constant dense<0.000000e+00> : vector<16x128xf32>
    %5 = tpu.matmul %3, %4, %cst {dimension_numbers = #tpu.dot_dimension_numbers<[1], [0], [0], [1], [0, 0, 1, 1], [], []>} : vector<16x128xbf16>, vector<128x128xbf16>, vector<16x128xf32> -> vector<16x128xf32>
    %c0_7 = arith.constant 0 : index
    %c0_8 = arith.constant 0 : index
    %6 = vector.load %arg5[%c0_7, %c0_8] : memref<16x128xf32, #tpu.memory_space<vmem>>, vector<1x128xf32>
    %7 = vector.broadcast %6 : vector<1x128xf32> to vector<16x128xf32>
    %8 = arith.addf %5, %7 : vector<16x128xf32>
    %c128 = arith.constant 128 : index
    %c0_9 = arith.constant 0 : index
    %9 = vector.load %arg4[%c128, %c0_9] : memref<2176x128xbf16, #tpu.memory_space<vmem>>, vector<128x128xbf16>
    %cst_10 = arith.constant dense<0.000000e+00> : vector<16x128xf32>
    %10 = tpu.matmul %3, %9, %cst_10 {dimension_numbers = #tpu.dot_dimension_numbers<[1], [0], [0], [1], [0, 0, 1, 1], [], []>} : vector<16x128xbf16>, vector<128x128xbf16>, vector<16x128xf32> -> vector<16x128xf32>
    %c1 = arith.constant 1 : index
    %c0_11 = arith.constant 0 : index
    %11 = vector.load %arg5[%c1, %c0_11] : memref<16x128xf32, #tpu.memory_space<vmem>>, vector<1x128xf32>
    %12 = vector.broadcast %11 : vector<1x128xf32> to vector<16x128xf32>
    %13 = arith.addf %10, %12 : vector<16x128xf32>
    %14 = arith.truncf %13 : vector<16x128xf32> to vector<16x128xbf16>
    %cst_12 = arith.constant dense<0.000000e+00> : vector<16x128xf32>
    %15 = tpu.matmul %14, %2, %cst_12 {dimension_numbers = #tpu.dot_dimension_numbers<[1], [0], [0], [1], [0, 0, 1, 1], [], []>} : vector<16x128xbf16>, vector<128x128xbf16>, vector<16x128xf32> -> vector<16x128xf32>
    %16 = tpu.iota {dimensions = array<i32: 1>} : vector<16x128xi32>
    %17 = tpu.iota {dimensions = array<i32: 0>} : vector<16x128xi32>
    %c8_i32 = arith.constant 8 : i32
    %18 = vector.broadcast %c8_i32 : i32 to vector<16x128xi32>
    %19 = arith.muli %17, %18 : vector<16x128xi32>
    %20 = arith.cmpi sge, %16, %19 : vector<16x128xi32>
    %c1_i32 = arith.constant 1 : i32
    %21 = vector.broadcast %c1_i32 : i32 to vector<16x128xi32>
    %22 = arith.addi %17, %21 : vector<16x128xi32>
    %c8_i32_13 = arith.constant 8 : i32
    %23 = vector.broadcast %c8_i32_13 : i32 to vector<16x128xi32>
    %24 = arith.muli %22, %23 : vector<16x128xi32>
    %25 = arith.cmpi slt, %16, %24 : vector<16x128xi32>
    %26 = arith.andi %20, %25 : vector<16x128xi1>
    %cst_14 = arith.constant -1.000000e+30 : f32
    %27 = vector.broadcast %cst_14 : f32 to vector<16x128xf32>
    %28 = arith.select %26, %15, %27 : vector<16x128xi1>, vector<16x128xf32>
    %cst_15 = arith.constant dense<0xFF800000> : vector<16xf32>
    %29 = vector.multi_reduction <maximumf>, %28, %cst_15 [1] : vector<16x128xf32> to vector<16xf32>
    %30 = vector.shape_cast %29 : vector<16xf32> to vector<16x1xf32>
    %31 = vector.broadcast %30 : vector<16x1xf32> to vector<16x128xf32>
    %32 = arith.subf %28, %31 : vector<16x128xf32>
    %33 = math.exp %32 : vector<16x128xf32>
    %cst_16 = arith.constant dense<0.000000e+00> : vector<16xf32>
    %34 = vector.multi_reduction <add>, %33, %cst_16 [1] : vector<16x128xf32> to vector<16xf32>
    %35 = vector.shape_cast %34 : vector<16xf32> to vector<16x1xf32>
    %36 = tpu.reciprocal %35 {approx = true} : vector<16x1xf32> -> vector<16x1xf32>
    %37 = vector.broadcast %36 : vector<16x1xf32> to vector<16x128xf32>
    %38 = arith.mulf %33, %37 : vector<16x128xf32>
    %39 = arith.truncf %38 : vector<16x128xf32> to vector<16x128xbf16>
    %cst_17 = arith.constant dense<0.000000e+00> : vector<16x128xf32>
    %40 = tpu.matmul %39, %1, %cst_17 {dimension_numbers = #tpu.dot_dimension_numbers<[1], [0], [0], [1], [0, 0, 1, 1], [], []>} : vector<16x128xbf16>, vector<128x128xbf16>, vector<16x128xf32> -> vector<16x128xf32>
    %41 = arith.truncf %40 : vector<16x128xf32> to vector<16x128xbf16>
    %c256 = arith.constant 256 : index
    %c0_18 = arith.constant 0 : index
    %42 = vector.load %arg4[%c256, %c0_18] : memref<2176x128xbf16, #tpu.memory_space<vmem>>, vector<128x128xbf16>
    %cst_19 = arith.constant dense<0.000000e+00> : vector<16x128xf32>
    %43 = tpu.matmul %41, %42, %cst_19 {dimension_numbers = #tpu.dot_dimension_numbers<[1], [0], [0], [1], [0, 0, 1, 1], [], []>} : vector<16x128xbf16>, vector<128x128xbf16>, vector<16x128xf32> -> vector<16x128xf32>
    %c2 = arith.constant 2 : index
    %c0_20 = arith.constant 0 : index
    %44 = vector.load %arg5[%c2, %c0_20] : memref<16x128xf32, #tpu.memory_space<vmem>>, vector<1x128xf32>
    %45 = vector.broadcast %44 : vector<1x128xf32> to vector<16x128xf32>
    %46 = arith.addf %43, %45 : vector<16x128xf32>
    %47 = arith.truncf %8 : vector<16x128xf32> to vector<16x128xbf16>
    %c384 = arith.constant 384 : index
    %c0_21 = arith.constant 0 : index
    %48 = vector.load %arg4[%c384, %c0_21] : memref<2176x128xbf16, #tpu.memory_space<vmem>>, vector<128x128xbf16>
    %cst_22 = arith.constant dense<0.000000e+00> : vector<16x128xf32>
    %49 = tpu.matmul %47, %48, %cst_22 {dimension_numbers = #tpu.dot_dimension_numbers<[1], [0], [0], [1], [0, 0, 1, 1], [], []>} : vector<16x128xbf16>, vector<128x128xbf16>, vector<16x128xf32> -> vector<16x128xf32>
    %50 = arith.truncf %46 : vector<16x128xf32> to vector<16x128xbf16>
    %c512 = arith.constant 512 : index
    %c0_23 = arith.constant 0 : index
    %51 = vector.load %arg4[%c512, %c0_23] : memref<2176x128xbf16, #tpu.memory_space<vmem>>, vector<128x128xbf16>
    %cst_24 = arith.constant dense<0.000000e+00> : vector<16x128xf32>
    %52 = tpu.matmul %50, %51, %cst_24 {dimension_numbers = #tpu.dot_dimension_numbers<[1], [0], [0], [1], [0, 0, 1, 1], [], []>} : vector<16x128xbf16>, vector<128x128xbf16>, vector<16x128xf32> -> vector<16x128xf32>
    %53 = arith.addf %49, %52 : vector<16x128xf32>
    %c3 = arith.constant 3 : index
    %c0_25 = arith.constant 0 : index
    %54 = vector.load %arg5[%c3, %c0_25] : memref<16x128xf32, #tpu.memory_space<vmem>>, vector<1x128xf32>
    %55 = vector.broadcast %54 : vector<1x128xf32> to vector<16x128xf32>
    %56 = arith.addf %53, %55 : vector<16x128xf32>
    %57 = arith.truncf %8 : vector<16x128xf32> to vector<16x128xbf16>
    %c640 = arith.constant 640 : index
    %c0_26 = arith.constant 0 : index
    %58 = vector.load %arg4[%c640, %c0_26] : memref<2176x128xbf16, #tpu.memory_space<vmem>>, vector<128x128xbf16>
    %cst_27 = arith.constant dense<0.000000e+00> : vector<16x128xf32>
    %59 = tpu.matmul %57, %58, %cst_27 {dimension_numbers = #tpu.dot_dimension_numbers<[1], [0], [0], [1], [0, 0, 1, 1], [], []>} : vector<16x128xbf16>, vector<128x128xbf16>, vector<16x128xf32> -> vector<16x128xf32>
    %60 = arith.truncf %46 : vector<16x128xf32> to vector<16x128xbf16>
    %c768 = arith.constant 768 : index
    %c0_28 = arith.constant 0 : index
    %61 = vector.load %arg4[%c768, %c0_28] : memref<2176x128xbf16, #tpu.memory_space<vmem>>, vector<128x128xbf16>
    %cst_29 = arith.constant dense<0.000000e+00> : vector<16x128xf32>
    %62 = tpu.matmul %60, %61, %cst_29 {dimension_numbers = #tpu.dot_dimension_numbers<[1], [0], [0], [1], [0, 0, 1, 1], [], []>} : vector<16x128xbf16>, vector<128x128xbf16>, vector<16x128xf32> -> vector<16x128xf32>
    %63 = arith.addf %59, %62 : vector<16x128xf32>
    %c4 = arith.constant 4 : index
    %c0_30 = arith.constant 0 : index
    %64 = vector.load %arg5[%c4, %c0_30] : memref<16x128xf32, #tpu.memory_space<vmem>>, vector<1x128xf32>
    %65 = vector.broadcast %64 : vector<1x128xf32> to vector<16x128xf32>
    %66 = arith.addf %63, %65 : vector<16x128xf32>
    %67 = arith.negf %66 : vector<16x128xf32>
    %68 = math.exp %67 : vector<16x128xf32>
    %cst_31 = arith.constant 1.000000e+00 : f32
    %69 = vector.broadcast %cst_31 : f32 to vector<16x128xf32>
    %70 = arith.addf %69, %68 : vector<16x128xf32>
    %71 = arith.divf %69, %70 : vector<16x128xf32>
    %72 = arith.mulf %56, %71 : vector<16x128xf32>
    %73 = arith.truncf %0 : vector<16x128xf32> to vector<16x128xbf16>
    %c896 = arith.constant 896 : index
    %c0_32 = arith.constant 0 : index
    %74 = vector.load %arg4[%c896, %c0_32] : memref<2176x128xbf16, #tpu.memory_space<vmem>>, vector<128x128xbf16>
    %cst_33 = arith.constant dense<0.000000e+00> : vector<16x128xf32>
    %75 = tpu.matmul %73, %74, %cst_33 {dimension_numbers = #tpu.dot_dimension_numbers<[1], [0], [0], [1], [0, 0, 1, 1], [], []>} : vector<16x128xbf16>, vector<128x128xbf16>, vector<16x128xf32> -> vector<16x128xf32>
    %76 = arith.truncf %72 : vector<16x128xf32> to vector<16x128xbf16>
    %c1024 = arith.constant 1024 : index
    %c0_34 = arith.constant 0 : index
    %77 = vector.load %arg4[%c1024, %c0_34] : memref<2176x128xbf16, #tpu.memory_space<vmem>>, vector<128x128xbf16>
    %cst_35 = arith.constant dense<0.000000e+00> : vector<16x128xf32>
    %78 = tpu.matmul %76, %77, %cst_35 {dimension_numbers = #tpu.dot_dimension_numbers<[1], [0], [0], [1], [0, 0, 1, 1], [], []>} : vector<16x128xbf16>, vector<128x128xbf16>, vector<16x128xf32> -> vector<16x128xf32>
    %79 = arith.addf %75, %78 : vector<16x128xf32>
    %c5 = arith.constant 5 : index
    %c0_36 = arith.constant 0 : index
    %80 = vector.load %arg5[%c5, %c0_36] : memref<16x128xf32, #tpu.memory_space<vmem>>, vector<1x128xf32>
    %81 = vector.broadcast %80 : vector<1x128xf32> to vector<16x128xf32>
    %82 = arith.addf %79, %81 : vector<16x128xf32>
    %cst_37 = arith.constant dense<0.000000e+00> : vector<16xf32>
    %83 = vector.multi_reduction <add>, %82, %cst_37 [1] : vector<16x128xf32> to vector<16xf32>
    %84 = vector.shape_cast %83 : vector<16xf32> to vector<16x1xf32>
    %cst_38 = arith.constant 3.125000e-02 : f32
    %85 = vector.broadcast %cst_38 : f32 to vector<16x1xf32>
    %86 = arith.mulf %84, %85 : vector<16x1xf32>
    %87 = arith.mulf %82, %82 : vector<16x128xf32>
    %cst_39 = arith.constant dense<0.000000e+00> : vector<16xf32>
    %88 = vector.multi_reduction <add>, %87, %cst_39 [1] : vector<16x128xf32> to vector<16xf32>
    %89 = vector.shape_cast %88 : vector<16xf32> to vector<16x1xf32>
    %cst_40 = arith.constant 3.125000e-02 : f32
    %90 = vector.broadcast %cst_40 : f32 to vector<16x1xf32>
    %91 = arith.mulf %89, %90 : vector<16x1xf32>
    %92 = arith.mulf %86, %86 : vector<16x1xf32>
    %93 = arith.subf %91, %92 : vector<16x1xf32>
    %94 = vector.broadcast %86 : vector<16x1xf32> to vector<16x128xf32>
    %95 = arith.subf %82, %94 : vector<16x128xf32>
    %cst_41 = arith.constant 9.99999974E-6 : f32
    %96 = vector.broadcast %cst_41 : f32 to vector<16x1xf32>
    %97 = arith.addf %93, %96 : vector<16x1xf32>
    %98 = math.rsqrt %97 : vector<16x1xf32>
    %99 = vector.broadcast %98 : vector<16x1xf32> to vector<16x128xf32>
    %100 = arith.mulf %95, %99 : vector<16x128xf32>
    %c6 = arith.constant 6 : index
    %c0_42 = arith.constant 0 : index
    %101 = vector.load %arg5[%c6, %c0_42] : memref<16x128xf32, #tpu.memory_space<vmem>>, vector<1x128xf32>
    %102 = vector.broadcast %101 : vector<1x128xf32> to vector<16x128xf32>
    %103 = arith.mulf %100, %102 : vector<16x128xf32>
    %c7 = arith.constant 7 : index
    %c0_43 = arith.constant 0 : index
    %104 = vector.load %arg5[%c7, %c0_43] : memref<16x128xf32, #tpu.memory_space<vmem>>, vector<1x128xf32>
    %105 = vector.broadcast %104 : vector<1x128xf32> to vector<16x128xf32>
    %106 = arith.addf %103, %105 : vector<16x128xf32>
    %cst_44 = arith.constant 0.000000e+00 : f32
    %107 = vector.broadcast %cst_44 : f32 to vector<16x128xf32>
    %108 = arith.maximumf %106, %107 : vector<16x128xf32>
    %109 = arith.truncf %108 : vector<16x128xf32> to vector<16x128xbf16>
    %c1152 = arith.constant 1152 : index
    %c0_45 = arith.constant 0 : index
    %110 = vector.load %arg4[%c1152, %c0_45] : memref<2176x128xbf16, #tpu.memory_space<vmem>>, vector<128x128xbf16>
    %cst_46 = arith.constant dense<0.000000e+00> : vector<16x128xf32>
    %111 = tpu.matmul %109, %110, %cst_46 {dimension_numbers = #tpu.dot_dimension_numbers<[1], [0], [0], [1], [0, 0, 1, 1], [], []>} : vector<16x128xbf16>, vector<128x128xbf16>, vector<16x128xf32> -> vector<16x128xf32>
    %c8 = arith.constant 8 : index
    %c0_47 = arith.constant 0 : index
    %112 = vector.load %arg5[%c8, %c0_47] : memref<16x128xf32, #tpu.memory_space<vmem>>, vector<1x128xf32>
    %113 = vector.broadcast %112 : vector<1x128xf32> to vector<16x128xf32>
    %114 = arith.addf %111, %113 : vector<16x128xf32>
    %115 = arith.addf %114, %0 : vector<16x128xf32>
    %116 = arith.truncf %115 : vector<16x128xf32> to vector<16x128xbf16>
    %c1280 = arith.constant 1280 : index
    %c0_48 = arith.constant 0 : index
    %117 = vector.load %arg4[%c1280, %c0_48] : memref<2176x128xbf16, #tpu.memory_space<vmem>>, vector<128x128xbf16>
    %cst_49 = arith.constant dense<0.000000e+00> : vector<16x128xf32>
    %118 = tpu.matmul %116, %117, %cst_49 {dimension_numbers = #tpu.dot_dimension_numbers<[1], [0], [0], [1], [0, 0, 1, 1], [], []>} : vector<16x128xbf16>, vector<128x128xbf16>, vector<16x128xf32> -> vector<16x128xf32>
    %c9 = arith.constant 9 : index
    %c0_50 = arith.constant 0 : index
    %119 = vector.load %arg5[%c9, %c0_50] : memref<16x128xf32, #tpu.memory_space<vmem>>, vector<1x128xf32>
    %120 = vector.broadcast %119 : vector<1x128xf32> to vector<16x128xf32>
    %121 = arith.addf %118, %120 : vector<16x128xf32>
    %c1408 = arith.constant 1408 : index
    %c0_51 = arith.constant 0 : index
    %122 = vector.load %arg4[%c1408, %c0_51] : memref<2176x128xbf16, #tpu.memory_space<vmem>>, vector<128x128xbf16>
    %cst_52 = arith.constant dense<0.000000e+00> : vector<16x128xf32>
    %123 = tpu.matmul %116, %122, %cst_52 {dimension_numbers = #tpu.dot_dimension_numbers<[1], [0], [0], [1], [0, 0, 1, 1], [], []>} : vector<16x128xbf16>, vector<128x128xbf16>, vector<16x128xf32> -> vector<16x128xf32>
    %c10 = arith.constant 10 : index
    %c0_53 = arith.constant 0 : index
    %124 = vector.load %arg5[%c10, %c0_53] : memref<16x128xf32, #tpu.memory_space<vmem>>, vector<1x128xf32>
    %125 = vector.broadcast %124 : vector<1x128xf32> to vector<16x128xf32>
    %126 = arith.addf %123, %125 : vector<16x128xf32>
    %127 = arith.truncf %126 : vector<16x128xf32> to vector<16x128xbf16>
    %cst_54 = arith.constant dense<0.000000e+00> : vector<16x128xf32>
    %128 = tpu.matmul %127, %2, %cst_54 {dimension_numbers = #tpu.dot_dimension_numbers<[1], [0], [0], [1], [0, 0, 1, 1], [], []>} : vector<16x128xbf16>, vector<128x128xbf16>, vector<16x128xf32> -> vector<16x128xf32>
    %129 = tpu.iota {dimensions = array<i32: 1>} : vector<16x128xi32>
    %130 = tpu.iota {dimensions = array<i32: 0>} : vector<16x128xi32>
    %c8_i32_55 = arith.constant 8 : i32
    %131 = vector.broadcast %c8_i32_55 : i32 to vector<16x128xi32>
    %132 = arith.muli %130, %131 : vector<16x128xi32>
    %133 = arith.cmpi sge, %129, %132 : vector<16x128xi32>
    %c1_i32_56 = arith.constant 1 : i32
    %134 = vector.broadcast %c1_i32_56 : i32 to vector<16x128xi32>
    %135 = arith.addi %130, %134 : vector<16x128xi32>
    %c8_i32_57 = arith.constant 8 : i32
    %136 = vector.broadcast %c8_i32_57 : i32 to vector<16x128xi32>
    %137 = arith.muli %135, %136 : vector<16x128xi32>
    %138 = arith.cmpi slt, %129, %137 : vector<16x128xi32>
    %139 = arith.andi %133, %138 : vector<16x128xi1>
    %cst_58 = arith.constant -1.000000e+30 : f32
    %140 = vector.broadcast %cst_58 : f32 to vector<16x128xf32>
    %141 = arith.select %139, %128, %140 : vector<16x128xi1>, vector<16x128xf32>
    %cst_59 = arith.constant dense<0xFF800000> : vector<16xf32>
    %142 = vector.multi_reduction <maximumf>, %141, %cst_59 [1] : vector<16x128xf32> to vector<16xf32>
    %143 = vector.shape_cast %142 : vector<16xf32> to vector<16x1xf32>
    %144 = vector.broadcast %143 : vector<16x1xf32> to vector<16x128xf32>
    %145 = arith.subf %141, %144 : vector<16x128xf32>
    %146 = math.exp %145 : vector<16x128xf32>
    %cst_60 = arith.constant dense<0.000000e+00> : vector<16xf32>
    %147 = vector.multi_reduction <add>, %146, %cst_60 [1] : vector<16x128xf32> to vector<16xf32>
    %148 = vector.shape_cast %147 : vector<16xf32> to vector<16x1xf32>
    %149 = tpu.reciprocal %148 {approx = true} : vector<16x1xf32> -> vector<16x1xf32>
    %150 = vector.broadcast %149 : vector<16x1xf32> to vector<16x128xf32>
    %151 = arith.mulf %146, %150 : vector<16x128xf32>
    %152 = arith.truncf %151 : vector<16x128xf32> to vector<16x128xbf16>
    %cst_61 = arith.constant dense<0.000000e+00> : vector<16x128xf32>
    %153 = tpu.matmul %152, %1, %cst_61 {dimension_numbers = #tpu.dot_dimension_numbers<[1], [0], [0], [1], [0, 0, 1, 1], [], []>} : vector<16x128xbf16>, vector<128x128xbf16>, vector<16x128xf32> -> vector<16x128xf32>
    %154 = arith.truncf %153 : vector<16x128xf32> to vector<16x128xbf16>
    %c1536 = arith.constant 1536 : index
    %c0_62 = arith.constant 0 : index
    %155 = vector.load %arg4[%c1536, %c0_62] : memref<2176x128xbf16, #tpu.memory_space<vmem>>, vector<128x128xbf16>
    %cst_63 = arith.constant dense<0.000000e+00> : vector<16x128xf32>
    %156 = tpu.matmul %154, %155, %cst_63 {dimension_numbers = #tpu.dot_dimension_numbers<[1], [0], [0], [1], [0, 0, 1, 1], [], []>} : vector<16x128xbf16>, vector<128x128xbf16>, vector<16x128xf32> -> vector<16x128xf32>
    %c11 = arith.constant 11 : index
    %c0_64 = arith.constant 0 : index
    %157 = vector.load %arg5[%c11, %c0_64] : memref<16x128xf32, #tpu.memory_space<vmem>>, vector<1x128xf32>
    %158 = vector.broadcast %157 : vector<1x128xf32> to vector<16x128xf32>
    %159 = arith.addf %156, %158 : vector<16x128xf32>
    %160 = arith.truncf %121 : vector<16x128xf32> to vector<16x128xbf16>
    %c1664 = arith.constant 1664 : index
    %c0_65 = arith.constant 0 : index
    %161 = vector.load %arg4[%c1664, %c0_65] : memref<2176x128xbf16, #tpu.memory_space<vmem>>, vector<128x128xbf16>
    %cst_66 = arith.constant dense<0.000000e+00> : vector<16x128xf32>
    %162 = tpu.matmul %160, %161, %cst_66 {dimension_numbers = #tpu.dot_dimension_numbers<[1], [0], [0], [1], [0, 0, 1, 1], [], []>} : vector<16x128xbf16>, vector<128x128xbf16>, vector<16x128xf32> -> vector<16x128xf32>
    %163 = arith.truncf %159 : vector<16x128xf32> to vector<16x128xbf16>
    %c1792 = arith.constant 1792 : index
    %c0_67 = arith.constant 0 : index
    %164 = vector.load %arg4[%c1792, %c0_67] : memref<2176x128xbf16, #tpu.memory_space<vmem>>, vector<128x128xbf16>
    %cst_68 = arith.constant dense<0.000000e+00> : vector<16x128xf32>
    %165 = tpu.matmul %163, %164, %cst_68 {dimension_numbers = #tpu.dot_dimension_numbers<[1], [0], [0], [1], [0, 0, 1, 1], [], []>} : vector<16x128xbf16>, vector<128x128xbf16>, vector<16x128xf32> -> vector<16x128xf32>
    %166 = arith.addf %162, %165 : vector<16x128xf32>
    %c12 = arith.constant 12 : index
    %c0_69 = arith.constant 0 : index
    %167 = vector.load %arg5[%c12, %c0_69] : memref<16x128xf32, #tpu.memory_space<vmem>>, vector<1x128xf32>
    %168 = vector.broadcast %167 : vector<1x128xf32> to vector<16x128xf32>
    %169 = arith.addf %166, %168 : vector<16x128xf32>
    %170 = arith.truncf %121 : vector<16x128xf32> to vector<16x128xbf16>
    %c1920 = arith.constant 1920 : index
    %c0_70 = arith.constant 0 : index
    %171 = vector.load %arg4[%c1920, %c0_70] : memref<2176x128xbf16, #tpu.memory_space<vmem>>, vector<128x128xbf16>
    %cst_71 = arith.constant dense<0.000000e+00> : vector<16x128xf32>
    %172 = tpu.matmul %170, %171, %cst_71 {dimension_numbers = #tpu.dot_dimension_numbers<[1], [0], [0], [1], [0, 0, 1, 1], [], []>} : vector<16x128xbf16>, vector<128x128xbf16>, vector<16x128xf32> -> vector<16x128xf32>
    %173 = arith.truncf %159 : vector<16x128xf32> to vector<16x128xbf16>
    %c2048 = arith.constant 2048 : index
    %c0_72 = arith.constant 0 : index
    %174 = vector.load %arg4[%c2048, %c0_72] : memref<2176x128xbf16, #tpu.memory_space<vmem>>, vector<128x128xbf16>
    %cst_73 = arith.constant dense<0.000000e+00> : vector<16x128xf32>
    %175 = tpu.matmul %173, %174, %cst_73 {dimension_numbers = #tpu.dot_dimension_numbers<[1], [0], [0], [1], [0, 0, 1, 1], [], []>} : vector<16x128xbf16>, vector<128x128xbf16>, vector<16x128xf32> -> vector<16x128xf32>
    %176 = arith.addf %172, %175 : vector<16x128xf32>
    %c13 = arith.constant 13 : index
    %c0_74 = arith.constant 0 : index
    %177 = vector.load %arg5[%c13, %c0_74] : memref<16x128xf32, #tpu.memory_space<vmem>>, vector<1x128xf32>
    %178 = vector.broadcast %177 : vector<1x128xf32> to vector<16x128xf32>
    %179 = arith.addf %176, %178 : vector<16x128xf32>
    %180 = arith.negf %179 : vector<16x128xf32>
    %181 = math.exp %180 : vector<16x128xf32>
    %cst_75 = arith.constant 1.000000e+00 : f32
    %182 = vector.broadcast %cst_75 : f32 to vector<16x128xf32>
    %183 = arith.addf %182, %181 : vector<16x128xf32>
    %184 = arith.divf %182, %183 : vector<16x128xf32>
    %185 = arith.mulf %169, %184 : vector<16x128xf32>
    %186 = arith.addf %72, %185 : vector<16x128xf32>
    %c0_76 = arith.constant 0 : index
    %c0_77 = arith.constant 0 : index
    %187 = vector.load %arg6[%c0_76, %c0_77] : memref<16x128xf32, #tpu.memory_space<vmem>>, vector<16x128xf32>
    tpu.vector_store %arg6[%c0_76, %c0_77], %186 {strides = array<i32>} : memref<16x128xf32, #tpu.memory_space<vmem>>, vector<16x128xf32>,
    return
  }
  func.func @transform_0(%arg0: i32) -> (i32, i32) {
    %c0_i32 = arith.constant 0 : i32
    %c0_i32_0 = arith.constant 0 : i32
    return %arg0, %c0_i32 : i32, i32
  }
  func.func @transform_1(%arg0: i32) -> (i32, i32) {
    %c0_i32 = arith.constant 0 : i32
    %c0_i32_0 = arith.constant 0 : i32
    return %arg0, %c0_i32 : i32, i32
  }
  func.func @transform_2(%arg0: i32) -> (i32, i32) {
    %c0_i32 = arith.constant 0 : i32
    %c0_i32_0 = arith.constant 0 : i32
    return %c0_i32, %arg0 : i32, i32
  }
  func.func @transform_3(%arg0: i32) -> (i32, i32) {
    %c0_i32 = arith.constant 0 : i32
    %c0_i32_0 = arith.constant 0 : i32
    %c0_i32_1 = arith.constant 0 : i32
    return %c0_i32, %c0_i32_0 : i32, i32
  }
  func.func @transform_4(%arg0: i32) -> (i32, i32) {
    %c0_i32 = arith.constant 0 : i32
    %c0_i32_0 = arith.constant 0 : i32
    %c0_i32_1 = arith.constant 0 : i32
    return %c0_i32, %c0_i32_0 : i32, i32
  }
  func.func @transform_5(%arg0: i32) -> (i32, i32) {
    %c0_i32 = arith.constant 0 : i32
    %c0_i32_0 = arith.constant 0 : i32
    return %arg0, %c0_i32 : i32, i32
  }
}

</mosaic_0001>

<bundles_post_ra>
// kernel: tpu_custom_call.1
= control target key start
LH: loop header
LB: loop body
LE: loop exit
PB: predicated region body
PF: predicated region fallthrough
CT: control target
= control target key end

     0   :  { %10 = vsyncpa [#allocation3], 0  ;;  %s4000_s0 = inlined_call_operand.hbm [shape: f32[16,128], index: 0, kind: input, shape index: {}]   ;;  %s4001_s1 = inlined_call_operand.hbm [shape: bf16[128,128], index: 1, kind: input, shape index: {}]   ;;  %s4002_s2 = inlined_call_operand.hbm [shape: bf16[128,128], index: 2, kind: input, shape index: {}]   ;;  %s4003_s3 = inlined_call_operand.hbm [shape: bf16[2176,128], index: 3, kind: input, shape index: {}]   ;;  %s4004_s4 = inlined_call_operand.hbm [shape: f32[16,128], index: 4, kind: input, shape index: {}]   ;;  %s4005_s5 = inlined_call_operand.hbm [shape: f32[16,128], index: 5, kind: output, shape index: {}]  }
   0x1   :  { %11 = vsyncpa [#allocation6], 0 }
   0x2   :  { %12 = vsyncpa [#allocation9], 0 }
   0x3   :  { %13 = vsyncpa [#allocation4], 0  ;;  %s3532_s18 = smov [#allocation5]   ;;  %s3392_s22 = scalar_lea.hbm %s4001_s1, 1024 }
   0x4   :  { %s31_s19 = sshll.u32 %s3532_s18, 4  ;;  %p3393_p0 = scmp.ne.s32.totalorder %s4001_s1, %s3392_s22  ;;  %s32_s19 = int_to_ptr.vmem [resolvable:$true] %s31_s19 }
   0x5   :  { %p3396_p1 = scmp.lt.u32.totalorder %s3392_s22, %s4001_s1 }
   0x7   :  { %p3398_p2 = pnand %p3396_p1, %p3393_p0 }
   0x9   :  { %3401 = shalt.err (!%p3398_p2)
}
   0xa   :  { %s3402_s27 = scalar_lea.vmem %s32_s19, 1024  ;;  %p3407_p4 = scmp.lt.s32.totalorder %s32_s19, %s32_s19 }
   0xb   :  { %p3403_p3 = scmp.ne.s32.totalorder %s32_s19, %s3402_s27  ;;  %p3408_p5 = scmp.lt.s32.totalorder %s3402_s27, %s3402_s27 }
   0xd   :  { %p3409_p6 = por %p3408_p5, %p3407_p4 }
   0xf   :  { %p3410_p7 = pnand %p3409_p6, %p3403_p3 }
  0x11   :  { %3413 = shalt.err (!%p3410_p7)
}
  0x12   :  { %s3533_s28 = smov 64   ;;  %s3534_s29 = smov 4  }
  0x13   :  { %37 = dma.hbm_to_vmem [thread:$0]  %s4001_s1, 1024, %s32_s19, [#allocation6], %s3533_s28, %s3533_s28, %s3534_s29  }
  0x14   :  { %s3535_s7 = smov [#allocation8]   ;;  %s3536_s9 = smov [#allocation2]  }
  0x15   :  { %s55_s8 = sshll.u32 %s3535_s7, 4  ;;  %s19_s10 = sshll.u32 %s3536_s9, 4  ;;  %s56_s8 = int_to_ptr.vmem [resolvable:$true] %s55_s8  ;;  %s20_s10 = int_to_ptr.vmem [resolvable:$true] %s19_s10 }
  0x16   :  { %s3414_s13 = scalar_lea.hbm %s4003_s3, 17408 }
  0x17   :  { %p3415_p8 = scmp.ne.s32.totalorder %s4003_s3, %s3414_s13  ;;  %p3418_p9 = scmp.lt.u32.totalorder %s3414_s13, %s4003_s3 }
  0x19   :  { %p3420_p10 = pnand %p3418_p9, %p3415_p8 }
  0x1b   :  { %3423 = shalt.err (!%p3420_p10)
}
  0x1c   :  { %s3424_s1 = scalar_lea.vmem %s56_s8, 17408  ;;  %p3429_p12 = scmp.lt.s32.totalorder %s56_s8, %s56_s8 }
  0x1d   :  { %p3425_p11 = scmp.ne.s32.totalorder %s56_s8, %s3424_s1  ;;  %p3430_p13 = scmp.lt.s32.totalorder %s3424_s1, %s3424_s1 }
  0x1f   :  { %p3431_p0 = por %p3430_p13, %p3429_p12 }
  0x21   :  { %p3432_p1 = pnand %p3431_p0, %p3425_p11 }
  0x23   :  { %3435 = shalt.err (!%p3432_p1)
}
  0x24   :  { %61 = dma.hbm_to_vmem [thread:$0]  %s4003_s3, 17408, %s56_s8, [#allocation9], %s3533_s28, %s3533_s28, %s3534_s29  }
  0x25   :  { %s3436_s22 = scalar_lea.hbm %s4000_s0, 256 }
  0x26   :  { %p3437_p2 = scmp.ne.s32.totalorder %s4000_s0, %s3436_s22  ;;  %p3440_p3 = scmp.lt.u32.totalorder %s3436_s22, %s4000_s0 }
  0x28   :  { %p3442_p4 = pnand %p3440_p3, %p3437_p2 }
  0x2a   :  { %3445 = shalt.err (!%p3442_p4)
}
  0x2b   :  { %s3446_s27 = scalar_lea.vmem %s20_s10, 256  ;;  %p3451_p6 = scmp.lt.s32.totalorder %s20_s10, %s20_s10 }
  0x2c   :  { %p3447_p5 = scmp.ne.s32.totalorder %s20_s10, %s3446_s27  ;;  %p3452_p7 = scmp.lt.s32.totalorder %s3446_s27, %s3446_s27 }
  0x2e   :  { %p3453_p8 = por %p3452_p7, %p3451_p6 }
  0x30   :  { %p3454_p9 = pnand %p3453_p8, %p3447_p5 }
  0x32   :  { %3457 = shalt.err (!%p3454_p9)
}
  0x33   :  { %s3537_s3 = smov 128   ;;  %s3538_s30 = smov 8  }
  0x34   :  { %25 = dma.hbm_to_vmem [thread:$0]  %s4000_s0, 256, %s20_s10, [#allocation3], %s3537_s3, %s3537_s3, %s3538_s30  }
  0x35   :  { %s3539_s8 = smov [#allocation7]   ;;  %s3540_s11 = smov [#allocation10]  }
  0x36   :  { %s43_s9 = sshll.u32 %s3539_s8, 4  ;;  %s67_s12 = sshll.u32 %s3540_s11, 4  ;;  %s44_s9 = int_to_ptr.vmem [resolvable:$true] %s43_s9  ;;  %s68_s12 = int_to_ptr.vmem [resolvable:$true] %s67_s12 }
  0x37   :  { %s3458_s15 = scalar_lea.hbm %s4002_s2, 1024 }
  0x38   :  { %p3459_p10 = scmp.ne.s32.totalorder %s4002_s2, %s3458_s15  ;;  %p3462_p11 = scmp.lt.u32.totalorder %s3458_s15, %s4002_s2 }
  0x3a   :  { %p3464_p12 = pnand %p3462_p11, %p3459_p10 }
  0x3c   :  { %3467 = shalt.err (!%p3464_p12)
}
  0x3d   :  { %s3468_s0 = scalar_lea.vmem %s44_s9, 1024  ;;  %p3473_p0 = scmp.lt.s32.totalorder %s44_s9, %s44_s9 }
  0x3e   :  { %p3469_p13 = scmp.ne.s32.totalorder %s44_s9, %s3468_s0  ;;  %p3474_p1 = scmp.lt.s32.totalorder %s3468_s0, %s3468_s0 }
  0x40   :  { %p3475_p2 = por %p3474_p1, %p3473_p0 }
  0x42   :  { %p3476_p3 = pnand %p3475_p2, %p3469_p13 }
  0x44   :  { %3479 = shalt.err (!%p3476_p3)
}
  0x45   :  { %49 = dma.hbm_to_vmem [thread:$0]  %s4002_s2, 1024, %s44_s9, [#allocation6], %s3533_s28, %s3533_s28, %s3534_s29  }
  0x46   :  { %s3480_s22 = scalar_lea.hbm %s4004_s4, 256 }
  0x47   :  { %p3481_p4 = scmp.ne.s32.totalorder %s4004_s4, %s3480_s22  ;;  %p3484_p5 = scmp.lt.u32.totalorder %s3480_s22, %s4004_s4 }
  0x49   :  { %p3486_p6 = pnand %p3484_p5, %p3481_p4 }
  0x4b   :  { %3489 = shalt.err (!%p3486_p6)
}
  0x4c   :  { %s3490_s27 = scalar_lea.vmem %s68_s12, 256  ;;  %p3495_p8 = scmp.lt.s32.totalorder %s68_s12, %s68_s12 }
  0x4d   :  { %p3491_p7 = scmp.ne.s32.totalorder %s68_s12, %s3490_s27  ;;  %p3496_p9 = scmp.lt.s32.totalorder %s3490_s27, %s3490_s27 }
  0x4f   :  { %p3497_p10 = por %p3496_p9, %p3495_p8 }
  0x51   :  { %p3498_p11 = pnand %p3497_p10, %p3491_p7 }
  0x53   :  { %3501 = shalt.err (!%p3498_p11)
}
  0x54   :  { %73 = dma.hbm_to_vmem [thread:$0]  %s4004_s4, 256, %s68_s12, [#allocation9], %s3537_s3, %s3537_s3, %s3538_s30  }
  0x55   :  { %3524 = dma.done.wait [#allocation3], 256  }
  0x56   :  { %3525 = vsyncadd [#allocation3], 4294967040 }
  0x57   :  { %3526 = dma.done.wait [#allocation6], 2048  }
  0x58   :  { %3527 = vsyncadd [#allocation6], 4294965248 }
  0x59   :  { %3528 = dma.done.wait [#allocation9], 17664  }
  0x5a   :  { %3529 = vsyncadd [#allocation9], 4294949632  ;;  %v3541_v0 = vmov 0.0   ;;  %vm3542_vm0 = vmmov 0   ;;  %v3196_v1 = vld [vmem:[#allocation8 + $0x40] sm:$0xff]   ;;  %v3197_v2 = vld [vmem:[#allocation8 + $0x48] sm:$0xff]   ;;  %v435_v44 = vlaneseq }
  0x5b   :  { %2784 = vmatprep.subr.bf16.mxu1 %v3541_v0  ;;  %2800 = vmatprep.mubr.msk.bf16.mxu1 %vm3542_vm0, %v3541_v0  ;;  %v3198_v3 = vld [vmem:[#allocation8 + $0x50] sm:$0xff]   ;;  %v3204_v4 = vld [vmem:[#allocation8] sm:$0xff]   ;;  %v3199_v5 = vld [vmem:[#allocation8 + $0x58] sm:$0xff]   ;;  %s3543_s4 = smov [#allocation11]  }
  0x5c   :  { %2764 = vmatprep.subr.bf16.mxu0 %v3541_v0  ;;  %2780 = vmatprep.mubr.msk.bf16.mxu0 %vm3542_vm0, %v3541_v0  ;;  %v3205_v6 = vld [vmem:[#allocation8 + $0x8] sm:$0xff]   ;;  %v3200_v7 = vld [vmem:[#allocation8 + $0x60] sm:$0xff]   ;;  %v3206_v8 = vld [vmem:[#allocation8 + $0x10] sm:$0xff]   ;;  %v438_v45 = vshrl.u32 %v435_v44, 7  ;;  %v436_v48 = vand.u32 127, %v435_v44  ;;  %s2391_s29 = sshll.u32 %s3543_s4, 4  ;;  %s2392_s29 = int_to_ptr.vmem [resolvable:$true] %s2391_s29 }
  0x5d   :  { %2785 = vmatpush3.bf16.msra.mxu1 %v3196_v1  ;;  %2765 = vmatpush3.bf16.msra.mxu0 %v3204_v4  ;;  %v3201_v9 = vld [vmem:[#allocation8 + $0x68] sm:$0xff]   ;;  %v3207_v10 = vld [vmem:[#allocation8 + $0x18] sm:$0xff]   ;;  %v3202_v11 = vld [vmem:[#allocation8 + $0x70] sm:$0xff]   ;;  %s3502_s6 = scalar_lea.vmem %s2392_s29, 256  ;;  %p3507_p13 = scmp.lt.s32.totalorder %s2392_s29, %s2392_s29 }
  0x5e   :  { %2786 = vmatprep.subr.bf16.mxu1 %v3541_v0  ;;  %2766 = vmatprep.subr.bf16.mxu0 %v3541_v0  ;;  %v3208_v12 = vld [vmem:[#allocation8 + $0x20] sm:$0xff]   ;;  %v3203_v13 = vld [vmem:[#allocation8 + $0x78] sm:$0xff]   ;;  %v90_v14 = vld [vmem:[#allocation2] sm:$0xff]  ;;  %v444_v46 = vadd.s32 1, %v438_v45  ;;  %v439_v47 = vadd.s32 8, %v438_v45  ;;  %v440_v49 = vmul.u32 8, %v438_v45  ;;  %p3503_p12 = scmp.ne.s32.totalorder %s2392_s29, %s3502_s6  ;;  %p3508_p0 = scmp.lt.s32.totalorder %s3502_s6, %s3502_s6 }
  0x5f   :  { %v91_v15 = vld [vmem:[#allocation2 + $0x8] sm:$0xff]  ;;  %v3209_v16 = vld [vmem:[#allocation8 + $0x28] sm:$0xff]   ;;  %v3210_v18 = vld [vmem:[#allocation8 + $0x30] sm:$0xff]  }
  0x60   :  { %v3667_v17 = vpack.c.bf16 %v91_v15, %v90_v14  ;;  %v3211_v19 = vld [vmem:[#allocation8 + $0x38] sm:$0xff]   ;;  %v3212_v20 = vld [vmem:[#allocation7] sm:$0xff]   ;;  %v3213_v21 = vld [vmem:[#allocation7 + $0x8] sm:$0xff]   ;;  %v446_v50 = vmul.u32 8, %v444_v46  ;;  %v445_v51 = vadd.s32 1, %v439_v47  ;;  %vm3697_vm1 = vcmp.ge.s32.totalorder %v436_v48, %v440_v49  ;;  %p3509_p1 = por %p3508_p0, %p3507_p13 }
  0x61   :  { %2787 = vmatpush3.bf16.msra.mxu1 %v3197_v2  ;;  %2767 = vmatpush3.bf16.msra.mxu0 %v3205_v6  ;;  %v3214_v22 = vld [vmem:[#allocation7 + $0x10] sm:$0xff]   ;;  %v3215_v23 = vld [vmem:[#allocation7 + $0x18] sm:$0xff]   ;;  %v3216_v24 = vld [vmem:[#allocation7 + $0x20] sm:$0xff]   ;;  %v441_v54 = vmul.u32 8, %v439_v47 }
  0x62   :  { %2788 = vmatprep.subr.bf16.mxu1 %v3541_v0  ;;  %2768 = vmatprep.subr.bf16.mxu0 %v3541_v0  ;;  %v3217_v25 = vld [vmem:[#allocation7 + $0x28] sm:$0xff]   ;;  %v3685_v26 = vld [vmem:[#allocation7 + $0x30] sm:$0xff]   ;;  %v3689_v27 = vld [vmem:[#allocation7 + $0x38] sm:$0xff]   ;;  %vm3701_vm2 = vcmp.lt.s32.totalorder %v436_v48, %v446_v50  ;;  %v447_v55 = vmul.u32 8, %v445_v51  ;;  %p3510_p2 = pnand %p3509_p1, %p3503_p12 }
  0x63   :  { %v2414_v28 = vld [vmem:[#allocation10 + $0x1] ss:$0 sm:$0xff]  ;;  %v2405_v36 = vld [vmem:[#allocation10] ss:$0 sm:$0xff]  ;;  %vm450_vm3 = vmand %vm3697_vm1, %vm3701_vm2  ;;  %vm3709_vm4 = vcmp.ge.s32.totalorder %v436_v48, %v441_v54 }
  0x64   :  { %vm3713_vm5 = vcmp.lt.s32.totalorder %v436_v48, %v447_v55  ;;  %v3731_v1 = vld [vmem:[#allocation5] sm:$0xff]   ;;  %v3734_v2 = vld [vmem:[#allocation5 + $0x8] sm:$0xff]   ;;  %v3754_v15 = vld [vmem:[#allocation5 + $0x30] sm:$0xff]  }
  0x65   :  { %2789 = vmatpush3.bf16.msra.mxu1 %v3198_v3  ;;  %2769 = vmatpush3.bf16.msra.mxu0 %v3206_v8  ;;  %vm451_vm6 = vmand %vm3709_vm4, %vm3713_vm5  ;;  %v3738_v3 = vld [vmem:[#allocation5 + $0x10] sm:$0xff]   ;;  %v3750_v14 = vld [vmem:[#allocation5 + $0x28] sm:$0xff]  }
  0x66   :  { %2790 = vmatprep.subr.bf16.mxu1 %v3541_v0  ;;  %2770 = vmatprep.subr.bf16.mxu0 %v3541_v0  ;;  %v3236_v46 = vld [vmem:[#allocation8 + $0xc0] sm:$0xff]   ;;  %v3237_v49 = vld [vmem:[#allocation8 + $0xc8] sm:$0xff]   ;;  %v3238_v50 = vld [vmem:[#allocation8 + $0xd0] sm:$0xff]  }
  0x67   :  { %v3239_v51 = vld [vmem:[#allocation8 + $0xd8] sm:$0xff]   ;;  %v3240_v54 = vld [vmem:[#allocation8 + $0xe0] sm:$0xff]   ;;  %v3241_v55 = vld [vmem:[#allocation8 + $0xe8] sm:$0xff]  }
  0x68   :  { %v3309_v56 = vld [vmem:[#allocation8 + $0x308] sm:$0xff]   ;;  %v3310_v57 = vld [vmem:[#allocation8 + $0x310] sm:$0xff]  }
  0x69   :  { %2791 = vmatpush3.bf16.msra.mxu1 %v3199_v5  ;;  %2771 = vmatpush3.bf16.msra.mxu0 %v3207_v10 }
  0x6a   :  { %2792 = vmatprep.subr.bf16.mxu1 %v3541_v0  ;;  %2772 = vmatprep.subr.bf16.mxu0 %v3541_v0 }
  0x6d   :  { %2793 = vmatpush3.bf16.msra.mxu1 %v3200_v7  ;;  %2773 = vmatpush3.bf16.msra.mxu0 %v3208_v12  ;;  %v3743_v12 = vld [vmem:[#allocation5 + $0x18] sm:$0xff]  }
  0x6e   :  { %2794 = vmatprep.subr.bf16.mxu1 %v3541_v0  ;;  %2774 = vmatprep.subr.bf16.mxu0 %v3541_v0 }
  0x71   :  { %2795 = vmatpush3.bf16.msra.mxu1 %v3201_v9  ;;  %2775 = vmatpush3.bf16.msra.mxu0 %v3209_v16  ;;  %v3758_v16 = vld [vmem:[#allocation5 + $0x38] sm:$0xff]  }
  0x72   :  { %2796 = vmatprep.subr.bf16.mxu1 %v3541_v0  ;;  %2776 = vmatprep.subr.bf16.mxu0 %v3541_v0 }
  0x75   :  { %2797 = vmatpush3.bf16.msra.mxu1 %v3202_v11  ;;  %2777 = vmatpush3.bf16.msra.mxu0 %v3210_v18  ;;  %v3228_v18 = vld [vmem:[#allocation8 + $0x80] sm:$0xff]  }
  0x76   :  { %2798 = vmatprep.subr.bf16.mxu1 %v3541_v0  ;;  %2778 = vmatprep.subr.bf16.mxu0 %v3541_v0 }
  0x79   :  { %2799 = vmatpush3.bf16.msra.mxu1 %v3203_v13  ;;  %2779 = vmatpush3.bf16.msra.mxu0 %v3211_v19  ;;  %v3747_v13 = vld [vmem:[#allocation5 + $0x20] sm:$0xff]   ;;  %v3229_v19 = vld [vmem:[#allocation8 + $0x88] sm:$0xff]  }
  0x7a   :  { %2824 = vmatprep.subr.bf16.mxu1 %v3541_v0  ;;  %2804 = vmatprep.subr.bf16.mxu0 %v3541_v0 }
  0x7c   :  { %2801 = vmatmul.mubr.bf16.vlgmr.msra.gmra.mrb[0].mxu1 %v3667_v17  ;;  %2781 = vmatmul.mubr.bf16.vlgmr.msra.gmra.mrb[0].mxu0 %v3667_v17 }
  0x7d   :  { %2840 = vmatprep.mubr.msk.bf16.mxu1 %vm3542_vm0, %v3541_v0  ;;  %2805 = vmatpush3.bf16.msra.mxu0 %v3212_v20  ;;  %v3230_v20 = vld [vmem:[#allocation8 + $0x90] sm:$0xff]  }
  0x7e   :  { %2820 = vmatprep.mubr.msk.bf16.mxu0 %vm3542_vm0, %v3541_v0  ;;  %2806 = vmatprep.subr.bf16.mxu0 %v3541_v0 }
  0x7f   :  { %2825 = vmatpush3.bf16.msra.mxu1 %v3731_v1 }
  0x80   :  { %2826 = vmatprep.subr.bf16.mxu1 %v3541_v0 }
  0x81   :  { %2807 = vmatpush3.bf16.msra.mxu0 %v3213_v21  ;;  %v3231_v21 = vld [vmem:[#allocation8 + $0x98] sm:$0xff]  }
  0x82   :  { %2808 = vmatprep.subr.bf16.mxu0 %v3541_v0 }
  0x83   :  { %2827 = vmatpush3.bf16.msra.mxu1 %v3734_v2 }
  0x84   :  { %2828 = vmatprep.subr.bf16.mxu1 %v3541_v0 }
  0x85   :  { %2809 = vmatpush3.bf16.msra.mxu0 %v3214_v22  ;;  %v3232_v22 = vld [vmem:[#allocation8 + $0xa0] sm:$0xff]  }
  0x86   :  { %2810 = vmatprep.subr.bf16.mxu0 %v3541_v0 }
  0x87   :  { %2829 = vmatpush3.bf16.msra.mxu1 %v3738_v3 }
  0x88   :  { %2830 = vmatprep.subr.bf16.mxu1 %v3541_v0 }
  0x89   :  { %2811 = vmatpush3.bf16.msra.mxu0 %v3215_v23  ;;  %v3233_v23 = vld [vmem:[#allocation8 + $0xa8] sm:$0xff]  }
  0x8a   :  { %2812 = vmatprep.subr.bf16.mxu0 %v3541_v0 }
  0x8b   :  { %2831 = vmatpush3.bf16.msra.mxu1 %v3743_v12 }
  0x8c   :  { %2832 = vmatprep.subr.bf16.mxu1 %v3541_v0 }
  0x8d   :  { %2813 = vmatpush3.bf16.msra.mxu0 %v3216_v24  ;;  %v3234_v24 = vld [vmem:[#allocation8 + $0xb0] sm:$0xff]  }
  0x8e   :  { %2814 = vmatprep.subr.bf16.mxu0 %v3541_v0 }
  0x8f   :  { %2833 = vmatpush3.bf16.msra.mxu1 %v3747_v13 }
  0x90   :  { %2834 = vmatprep.subr.bf16.mxu1 %v3541_v0 }
  0x91   :  { %2815 = vmatpush3.bf16.msra.mxu0 %v3217_v25 }
  0x92   :  { %2816 = vmatprep.subr.bf16.mxu0 %v3541_v0 }
  0x93   :  { %2835 = vmatpush3.bf16.msra.mxu1 %v3750_v14 }
  0x94   :  { %2836 = vmatprep.subr.bf16.mxu1 %v3541_v0 }
  0x95   :  { %2817 = vmatpush3.bf16.msra.mxu0 %v3685_v26 }
  0x96   :  { %2818 = vmatprep.subr.bf16.mxu0 %v3541_v0 }
  0x97   :  { %2837 = vmatpush3.bf16.msra.mxu1 %v3754_v15 }
  0x98   :  { %2838 = vmatprep.subr.bf16.mxu1 %v3541_v0 }
  0x99   :  { %2819 = vmatpush3.bf16.msra.mxu0 %v3689_v27 }
  0x9a   :  { %2844 = vmatprep.subr.bf16.mxu0 %v3541_v0 }
  0x9b   :  { %2839 = vmatpush3.bf16.msra.mxu1 %v3758_v16 }
  0x9c   :  { %2864 = vmatprep.subr.bf16.mxu1 %v3541_v0 }
 0x14f   :  { %v338_v29 = vpop.f32.mrb[0].mxu1  ;;  %v228_v37 = vpop.f32.mrb[0].mxu0 }
 0x150   :  { %v2802_v30 = vpop.f32.mrb[1].mxu1  ;;  %v339_v32 = vadd.f32 %v2414_v28, %v338_v29  ;;  %v229_v38 = vadd.f32 %v2405_v36, %v228_v37  ;;  %v2782_v39 = vpop.f32.mrb[1].mxu0  ;;  %v3254_v37 = vld [vmem:[#allocation8 + $0x110] sm:$0xff]  }
 0x151   :  { %v341_v31 = vpop.f32.mrb[2].mxu1  ;;  %v231_v40 = vpop.f32.mrb[2].mxu0  ;;  %v3256_v39 = vld [vmem:[#allocation8 + $0x120] sm:$0xff]  }
 0x152   :  { %v342_v33 = vadd.f32 %v2414_v28, %v341_v31  ;;  %v2803_v34 = vpop.f32.mrb[3].mxu1  ;;  %v232_v41 = vadd.f32 %v2405_v36, %v231_v40  ;;  %v2783_v42 = vpop.f32.mrb[3].mxu0  ;;  %v3253_v36 = vld [vmem:[#allocation8 + $0x108] sm:$0xff]  }
 0x153   :  { %v3235_v34 = vld [vmem:[#allocation8 + $0xb8] sm:$0xff]   ;;  %v3257_v40 = vld [vmem:[#allocation8 + $0x128] sm:$0xff]  }
 0x154   :  { %v345_v35 = vpack.c.bf16 %v342_v33, %v339_v32  ;;  %v3695_v43 = vpack.c.bf16 %v232_v41, %v229_v38  ;;  %v3255_v38 = vld [vmem:[#allocation8 + $0x118] sm:$0xff]   ;;  %v3258_v41 = vld [vmem:[#allocation8 + $0x130] sm:$0xff]  }
 0x156   :  { %2821 = vmatmul.mubr.bf16.vlgmr.msra.gmra.mrb[4].mxu0 %v345_v35  ;;  %v3252_v35 = vld [vmem:[#allocation8 + $0x100] sm:$0xff]  }
 0x157   :  { %2860 = vmatprep.mubr.msk.bf16.mxu0 %vm3542_vm0, %v3541_v0  ;;  %2845 = vmatpush3.bf16.msra.mxu0 %v3228_v18 }
 0x158   :  { %2846 = vmatprep.subr.bf16.mxu0 %v3541_v0 }
 0x15b   :  { %2847 = vmatpush3.bf16.msra.mxu0 %v3229_v19 }
 0x15c   :  { %2848 = vmatprep.subr.bf16.mxu0 %v3541_v0 }
 0x15f   :  { %2849 = vmatpush3.bf16.msra.mxu0 %v3230_v20 }
 0x160   :  { %2850 = vmatprep.subr.bf16.mxu0 %v3541_v0 }
 0x163   :  { %2851 = vmatpush3.bf16.msra.mxu0 %v3231_v21 }
 0x164   :  { %2852 = vmatprep.subr.bf16.mxu0 %v3541_v0 }
 0x167   :  { %2853 = vmatpush3.bf16.msra.mxu0 %v3232_v22  ;;  %v3260_v22 = vld [vmem:[#allocation8 + $0x180] sm:$0xff]  }
 0x168   :  { %2854 = vmatprep.subr.bf16.mxu0 %v3541_v0 }
 0x16b   :  { %2855 = vmatpush3.bf16.msra.mxu0 %v3233_v23 }
 0x16c   :  { %2856 = vmatprep.subr.bf16.mxu0 %v3541_v0 }
 0x16f   :  { %2857 = vmatpush3.bf16.msra.mxu0 %v3234_v24  ;;  %v3261_v24 = vld [vmem:[#allocation8 + $0x188] sm:$0xff]  }
 0x170   :  { %2858 = vmatprep.subr.bf16.mxu0 %v3541_v0 }
 0x173   :  { %2859 = vmatpush3.bf16.msra.mxu0 %v3235_v34 }
 0x174   :  { %2884 = vmatprep.subr.bf16.mxu0 %v3541_v0 }
 0x229   :  { %v428_v58 = vpop.f32.mrb[4].mxu0 }
 0x22a   :  { %v2822_v59 = vpop.f32.mrb[5].mxu0  ;;  %v452_v60 = vsel %vm450_vm3, %v428_v58, -1e+30  ;;  %v3242_v58 = vld [vmem:[#allocation8 + $0xf0] sm:$0xff]  }
 0x22b   :  { %454 = vmax.xlane.f32.xlu0 %v452_v60  ;;  %v431_v61 = vpop.f32.mrb[6].mxu0  ;;  %v3243_v59 = vld [vmem:[#allocation8 + $0xf8] sm:$0xff]  }
 0x22c   :  { %v2823_v62 = vpop.f32.mrb[7].mxu0  ;;  %v453_v63 = vsel %vm451_vm6, %v431_v61, -1e+30  ;;  %v3245_v61 = vld [vmem:[#allocation8 + $0x148] sm:$0xff]  }
 0x22d   :  { %v3246_v62 = vld [vmem:[#allocation8 + $0x150] sm:$0xff]  }
 0x22f   :  { %456 = vmax.xlane.f32.xlu0 %v453_v63 }
 0x2b8   :  { %v455_v4 = vpop.xlane.xlu0 %454 }
 0x2b9   :  { %v458_v5 = vsub.f32 %v452_v60, %v455_v4  ;;  %v3244_v60 = vld [vmem:[#allocation8 + $0x140] sm:$0xff]  }
 0x2ba   :  { %v3248_v4 = vld [vmem:[#allocation8 + $0x160] sm:$0xff]  }
 0x2bb   :  { %v460_v6 = vmul.f32 1.442695, %v458_v5  ;;  %v3249_v5 = vld [vmem:[#allocation8 + $0x168] sm:$0xff]  }
 0x2bc   :  { %v457_v7 = vpop.xlane.xlu0 %456 }
 0x2bd   :  { %3348 = vpow2.f32 %v460_v6  ;;  %v459_v8 = vsub.f32 %v453_v63, %v457_v7  ;;  %v3247_v63 = vld [vmem:[#allocation8 + $0x158] sm:$0xff]   ;;  %v3250_v6 = vld [vmem:[#allocation8 + $0x170] sm:$0xff]  }
 0x2be   :  { %v3251_v7 = vld [vmem:[#allocation8 + $0x178] sm:$0xff]  }
 0x2bf   :  { %v462_v9 = vmul.f32 1.442695, %v459_v8  ;;  %v3259_v8 = vld [vmem:[#allocation8 + $0x138] sm:$0xff]  }
 0x2c1   :  { %3350 = vpow2.f32 %v462_v9  ;;  %v2439_v9 = vld [vmem:[#allocation10 + $0x2] ss:$0 sm:$0xff] }
 0x2c7   :  { %v3349_v10 = vpop.eup %3348 }
 0x2c8   :  { %464 = vadd.xlane.f32.xlu1 %v3349_v10 }
 0x2cb   :  { %v3351_v11 = vpop.eup %3350 }
 0x2cc   :  { %466 = vadd.xlane.f32.xlu1 %v3351_v11 }
 0x355   :  { %v465_v25 = vpop.xlane.xlu1 %464 }
 0x356   :  { %3352 = vrcp.f32 %v465_v25  ;;  %v3263_v25 = vld [vmem:[#allocation8 + $0x198] sm:$0xff]  }
 0x359   :  { %v467_v28 = vpop.xlane.xlu1 %466 }
 0x35a   :  { %3354 = vrcp.f32 %v467_v28  ;;  %v3264_v28 = vld [vmem:[#allocation8 + $0x1a0] sm:$0xff]  }
 0x360   :  { %v3353_v29 = vpop.eup %3352 }
 0x361   :  { %v470_v31 = vmul.f32 %v3353_v29, %v3349_v10  ;;  %v3265_v29 = vld [vmem:[#allocation8 + $0x1a8] sm:$0xff]  }
 0x364   :  { %v3355_v30 = vpop.eup %3354 }
 0x365   :  { %v471_v32 = vmul.f32 %v3355_v30, %v3351_v11  ;;  %v3266_v30 = vld [vmem:[#allocation8 + $0x1b0] sm:$0xff]  }
 0x367   :  { %v472_v33 = vpack.c.bf16 %v471_v32, %v470_v31  ;;  %v3267_v32 = vld [vmem:[#allocation8 + $0x1b8] sm:$0xff]  }
 0x369   :  { %2841 = vmatmul.mubr.bf16.vlgmr.msra.gmra.mrb[4].mxu1 %v472_v33 }
 0x36a   :  { %2880 = vmatprep.mubr.msk.bf16.mxu1 %vm3542_vm0, %v3541_v0  ;;  %2865 = vmatpush3.bf16.msra.mxu1 %v3252_v35 }
 0x36b   :  { %2866 = vmatprep.subr.bf16.mxu1 %v3541_v0 }
 0x36e   :  { %2867 = vmatpush3.bf16.msra.mxu1 %v3253_v36 }
 0x36f   :  { %2868 = vmatprep.subr.bf16.mxu1 %v3541_v0 }
 0x372   :  { %2869 = vmatpush3.bf16.msra.mxu1 %v3254_v37 }
 0x373   :  { %2870 = vmatprep.subr.bf16.mxu1 %v3541_v0 }
 0x376   :  { %2871 = vmatpush3.bf16.msra.mxu1 %v3255_v38 }
 0x377   :  { %2872 = vmatprep.subr.bf16.mxu1 %v3541_v0 }
 0x37a   :  { %2873 = vmatpush3.bf16.msra.mxu1 %v3256_v39 }
 0x37b   :  { %2874 = vmatprep.subr.bf16.mxu1 %v3541_v0 }
 0x37e   :  { %2875 = vmatpush3.bf16.msra.mxu1 %v3257_v40  ;;  %v3268_v40 = vld [vmem:[#allocation8 + $0x1c0] sm:$0xff]  }
 0x37f   :  { %2876 = vmatprep.subr.bf16.mxu1 %v3541_v0 }
 0x382   :  { %2877 = vmatpush3.bf16.msra.mxu1 %v3258_v41  ;;  %v3269_v41 = vld [vmem:[#allocation8 + $0x200] sm:$0xff]  }
 0x383   :  { %2878 = vmatprep.subr.bf16.mxu1 %v3541_v0 }
 0x386   :  { %2879 = vmatpush3.bf16.msra.mxu1 %v3259_v8  ;;  %v2481_v8 = vld [vmem:[#allocation10 + $0x4] ss:$0 sm:$0xff] }
 0x387   :  { %2904 = vmatprep.subr.bf16.mxu1 %v3541_v0 }
 0x43c   :  { %v555_v42 = vpop.f32.mrb[4].mxu1 }
 0x43d   :  { %v2842_v44 = vpop.f32.mrb[5].mxu1 }
 0x43e   :  { %v558_v45 = vpop.f32.mrb[6].mxu1  ;;  %v3271_v44 = vld [vmem:[#allocation8 + $0x208] sm:$0xff]  }
 0x43f   :  { %v562_v47 = vpack.c.bf16 %v558_v45, %v555_v42  ;;  %v2843_v48 = vpop.f32.mrb[7].mxu1  ;;  %v3270_v42 = vld [vmem:[#allocation8 + $0x1c8] sm:$0xff]   ;;  %v3272_v45 = vld [vmem:[#allocation8 + $0x1d0] sm:$0xff]  }
 0x440   :  { %v3275_v48 = vld [vmem:[#allocation8 + $0x218] sm:$0xff]  }
 0x441   :  { %2861 = vmatmul.mubr.bf16.vlgmr.msra.gmra.mrb[8].mxu0 %v562_v47  ;;  %v3274_v47 = vld [vmem:[#allocation8 + $0x1d8] sm:$0xff]  }
 0x442   :  { %2885 = vmatpush3.bf16.msra.mxu0 %v3236_v46  ;;  %2900 = vmatprep.mubr.msk.bf16.mxu0 %vm3542_vm0, %v3541_v0  ;;  %v3273_v46 = vld [vmem:[#allocation8 + $0x210] sm:$0xff]  }
 0x443   :  { %2886 = vmatprep.subr.bf16.mxu0 %v3541_v0 }
 0x446   :  { %2887 = vmatpush3.bf16.msra.mxu0 %v3237_v49  ;;  %v3276_v49 = vld [vmem:[#allocation8 + $0x1e0] sm:$0xff]  }
 0x447   :  { %2888 = vmatprep.subr.bf16.mxu0 %v3541_v0 }
 0x44a   :  { %2889 = vmatpush3.bf16.msra.mxu0 %v3238_v50  ;;  %v3277_v50 = vld [vmem:[#allocation8 + $0x220] sm:$0xff]  }
 0x44b   :  { %2890 = vmatprep.subr.bf16.mxu0 %v3541_v0 }
 0x44e   :  { %2891 = vmatpush3.bf16.msra.mxu0 %v3239_v51  ;;  %v3278_v51 = vld [vmem:[#allocation8 + $0x1e8] sm:$0xff]  }
 0x44f   :  { %2892 = vmatprep.subr.bf16.mxu0 %v3541_v0 }
 0x452   :  { %2893 = vmatpush3.bf16.msra.mxu0 %v3240_v54  ;;  %v3279_v54 = vld [vmem:[#allocation8 + $0x228] sm:$0xff]  }
 0x453   :  { %2894 = vmatprep.subr.bf16.mxu0 %v3541_v0 }
 0x456   :  { %2895 = vmatpush3.bf16.msra.mxu0 %v3241_v55  ;;  %v3280_v55 = vld [vmem:[#allocation8 + $0x1f0] sm:$0xff]  }
 0x457   :  { %2896 = vmatprep.subr.bf16.mxu0 %v3541_v0 }
 0x45a   :  { %2897 = vmatpush3.bf16.msra.mxu0 %v3242_v58  ;;  %v3281_v58 = vld [vmem:[#allocation8 + $0x230] sm:$0xff]  }
 0x45b   :  { %2898 = vmatprep.subr.bf16.mxu0 %v3541_v0 }
 0x45e   :  { %2899 = vmatpush3.bf16.msra.mxu0 %v3243_v59  ;;  %v3282_v59 = vld [vmem:[#allocation8 + $0x1f8] sm:$0xff]  }
 0x45f   :  { %2924 = vmatprep.subr.bf16.mxu0 %v3541_v0 }
 0x461   :  { %2901 = vmatmul.mubr.bf16.vlgmr.msra.gmra.mrb[12].mxu0 %v3695_v43 }
 0x462   :  { %2925 = vmatpush3.bf16.msra.mxu0 %v3244_v60  ;;  %2940 = vmatprep.mubr.msk.bf16.mxu0 %vm3542_vm0, %v3541_v0  ;;  %v3283_v60 = vld [vmem:[#allocation8 + $0x238] sm:$0xff]  }
 0x463   :  { %2926 = vmatprep.subr.bf16.mxu0 %v3541_v0 }
 0x466   :  { %2927 = vmatpush3.bf16.msra.mxu0 %v3245_v61 }
 0x467   :  { %2928 = vmatprep.subr.bf16.mxu0 %v3541_v0 }
 0x46a   :  { %2929 = vmatpush3.bf16.msra.mxu0 %v3246_v62 }
 0x46b   :  { %2930 = vmatprep.subr.bf16.mxu0 %v3541_v0 }
 0x46e   :  { %2931 = vmatpush3.bf16.msra.mxu0 %v3247_v63 }
 0x46f   :  { %2932 = vmatprep.subr.bf16.mxu0 %v3541_v0 }
 0x472   :  { %2933 = vmatpush3.bf16.msra.mxu0 %v3248_v4 }
 0x473   :  { %2934 = vmatprep.subr.bf16.mxu0 %v3541_v0 }
 0x476   :  { %2935 = vmatpush3.bf16.msra.mxu0 %v3249_v5 }
 0x477   :  { %2936 = vmatprep.subr.bf16.mxu0 %v3541_v0 }
 0x47a   :  { %2937 = vmatpush3.bf16.msra.mxu0 %v3250_v6 }
 0x47b   :  { %2938 = vmatprep.subr.bf16.mxu0 %v3541_v0 }
 0x47e   :  { %2939 = vmatpush3.bf16.msra.mxu0 %v3251_v7 }
 0x47f   :  { %2964 = vmatprep.subr.bf16.mxu0 %v3541_v0 }
 0x481   :  { %2941 = vmatmul.mubr.bf16.vlgmr.msra.gmra.mrb[16].mxu0 %v3695_v43  ;;  %v3262_v43 = vld [vmem:[#allocation8 + $0x190] sm:$0xff]  }
 0x482   :  { %2980 = vmatprep.mubr.msk.bf16.mxu0 %vm3542_vm0, %v3541_v0  ;;  %2965 = vmatpush3.bf16.msra.mxu0 %v3268_v40 }
 0x483   :  { %2966 = vmatprep.subr.bf16.mxu0 %v3541_v0 }
 0x486   :  { %2967 = vmatpush3.bf16.msra.mxu0 %v3270_v42 }
 0x487   :  { %2968 = vmatprep.subr.bf16.mxu0 %v3541_v0 }
 0x48a   :  { %2969 = vmatpush3.bf16.msra.mxu0 %v3272_v45 }
 0x48b   :  { %2970 = vmatprep.subr.bf16.mxu0 %v3541_v0 }
 0x48e   :  { %2971 = vmatpush3.bf16.msra.mxu0 %v3274_v47 }
 0x48f   :  { %2972 = vmatprep.subr.bf16.mxu0 %v3541_v0 }
 0x492   :  { %2973 = vmatpush3.bf16.msra.mxu0 %v3276_v49 }
 0x493   :  { %2974 = vmatprep.subr.bf16.mxu0 %v3541_v0 }
 0x496   :  { %2975 = vmatpush3.bf16.msra.mxu0 %v3278_v51 }
 0x497   :  { %2976 = vmatprep.subr.bf16.mxu0 %v3541_v0 }
 0x49a   :  { %2977 = vmatpush3.bf16.msra.mxu0 %v3280_v55  ;;  %v3285_v55 = vld [vmem:[#allocation8 + $0x248] sm:$0xff]  }
 0x49b   :  { %2978 = vmatprep.subr.bf16.mxu0 %v3541_v0 }
 0x49e   :  { %2979 = vmatpush3.bf16.msra.mxu0 %v3282_v59  ;;  %v3287_v59 = vld [vmem:[#allocation8 + $0x258] sm:$0xff]  }
 0x49f   :  { %3004 = vmatprep.subr.bf16.mxu0 %v3541_v0 }
 0x4a1   :  { %2981 = vmatmul.mubr.bf16.vlgmr.msra.gmra.mrb[20].mxu0 %v3667_v17 }
 0x4a2   :  { %3020 = vmatprep.mubr.msk.bf16.mxu0 %vm3542_vm0, %v3541_v0 }
 0x514   :  { %v666_v10 = vpop.f32.mrb[8].mxu0 }
 0x515   :  { %v2862_v11 = vpop.f32.mrb[9].mxu0  ;;  %v667_v19 = vadd.f32 %v2439_v9, %v666_v10 }
 0x516   :  { %v669_v18 = vpop.f32.mrb[10].mxu0 }
 0x517   :  { %v670_v20 = vadd.f32 %v2439_v9, %v669_v18  ;;  %v2863_v21 = vpop.f32.mrb[11].mxu0 }
 0x519   :  { %v690_v23 = vpack.c.bf16 %v670_v20, %v667_v19 }
 0x51b   :  { %2881 = vmatmul.mubr.bf16.vlgmr.msra.gmra.mrb[8].mxu1 %v690_v23 }
 0x51c   :  { %2905 = vmatpush3.bf16.msra.mxu1 %v3260_v22  ;;  %2920 = vmatprep.mubr.msk.bf16.mxu1 %vm3542_vm0, %v3541_v0 }
 0x51d   :  { %2906 = vmatprep.subr.bf16.mxu1 %v3541_v0 }
 0x520   :  { %2907 = vmatpush3.bf16.msra.mxu1 %v3261_v24 }
 0x521   :  { %2908 = vmatprep.subr.bf16.mxu1 %v3541_v0 }
 0x524   :  { %2909 = vmatpush3.bf16.msra.mxu1 %v3262_v43 }
 0x525   :  { %2910 = vmatprep.subr.bf16.mxu1 %v3541_v0 }
 0x528   :  { %2911 = vmatpush3.bf16.msra.mxu1 %v3263_v25 }
 0x529   :  { %2912 = vmatprep.subr.bf16.mxu1 %v3541_v0 }
 0x52c   :  { %2913 = vmatpush3.bf16.msra.mxu1 %v3264_v28  ;;  %v2464_v28 = vld [vmem:[#allocation10 + $0x3] ss:$0 sm:$0xff] }
 0x52d   :  { %2914 = vmatprep.subr.bf16.mxu1 %v3541_v0 }
 0x530   :  { %2915 = vmatpush3.bf16.msra.mxu1 %v3265_v29 }
 0x531   :  { %2916 = vmatprep.subr.bf16.mxu1 %v3541_v0 }
 0x534   :  { %v3813_v31 = vpop.f32.mrb[12].mxu0  ;;  %2917 = vmatpush3.bf16.msra.mxu1 %v3266_v30 }
 0x535   :  { %v2902_v33 = vpop.f32.mrb[13].mxu0  ;;  %2918 = vmatprep.subr.bf16.mxu1 %v3541_v0 }
 0x536   :  { %v3816_v34 = vpop.f32.mrb[14].mxu0 }
 0x537   :  { %v2903_v35 = vpop.f32.mrb[15].mxu0 }
 0x538   :  { %2919 = vmatpush3.bf16.msra.mxu1 %v3267_v32 }
 0x539   :  { %2944 = vmatprep.subr.bf16.mxu1 %v3541_v0 }
 0x53b   :  { %2921 = vmatmul.mubr.bf16.vlgmr.msra.gmra.mrb[12].mxu1 %v690_v23 }
 0x53c   :  { %2960 = vmatprep.mubr.msk.bf16.mxu1 %vm3542_vm0, %v3541_v0  ;;  %2945 = vmatpush3.bf16.msra.mxu1 %v3269_v41  ;;  %v2500_v41 = vld [vmem:[#allocation10 + $0x5] ss:$0 sm:$0xff] }
 0x53d   :  { %2946 = vmatprep.subr.bf16.mxu1 %v3541_v0 }
 0x540   :  { %2947 = vmatpush3.bf16.msra.mxu1 %v3271_v44 }
 0x541   :  { %2948 = vmatprep.subr.bf16.mxu1 %v3541_v0 }
 0x544   :  { %2949 = vmatpush3.bf16.msra.mxu1 %v3273_v46 }
 0x545   :  { %2950 = vmatprep.subr.bf16.mxu1 %v3541_v0 }
 0x548   :  { %2951 = vmatpush3.bf16.msra.mxu1 %v3275_v48 }
 0x549   :  { %2952 = vmatprep.subr.bf16.mxu1 %v3541_v0 }
 0x54c   :  { %2953 = vmatpush3.bf16.msra.mxu1 %v3277_v50 }
 0x54d   :  { %2954 = vmatprep.subr.bf16.mxu1 %v3541_v0 }
 0x550   :  { %2955 = vmatpush3.bf16.msra.mxu1 %v3279_v54  ;;  %v3284_v54 = vld [vmem:[#allocation8 + $0x240] sm:$0xff]  }
 0x551   :  { %2956 = vmatprep.subr.bf16.mxu1 %v3541_v0 }
 0x554   :  { %v1095_v36 = vpop.f32.mrb[16].mxu0  ;;  %2957 = vmatpush3.bf16.msra.mxu1 %v3281_v58  ;;  %v3286_v58 = vld [vmem:[#allocation8 + $0x250] sm:$0xff]  }
 0x555   :  { %v2942_v37 = vpop.f32.mrb[17].mxu0  ;;  %2958 = vmatprep.subr.bf16.mxu1 %v3541_v0 }
 0x556   :  { %v3821_v38 = vpop.f32.mrb[18].mxu0 }
 0x557   :  { %v2943_v39 = vpop.f32.mrb[19].mxu0 }
 0x558   :  { %2959 = vmatpush3.bf16.msra.mxu1 %v3283_v60  ;;  %v3288_v60 = vld [vmem:[#allocation8 + $0x260] sm:$0xff]  }
 0x559   :  { %2984 = vmatprep.subr.bf16.mxu1 %v3541_v0 }
 0x5ee   :  { %v789_v61 = vpop.f32.mrb[8].mxu1 }
 0x5ef   :  { %v879_v62 = vadd.f32 %v3813_v31, %v789_v61  ;;  %v2882_v63 = vpop.f32.mrb[9].mxu1  ;;  %v3289_v61 = vld [vmem:[#allocation8 + $0x268] sm:$0xff]  }
 0x5f0   :  { %v792_v4 = vpop.f32.mrb[10].mxu1  ;;  %v3291_v63 = vld [vmem:[#allocation8 + $0x278] sm:$0xff]  }
 0x5f1   :  { %v882_v5 = vadd.f32 %v3816_v34, %v792_v4  ;;  %v2883_v6 = vpop.f32.mrb[11].mxu1  ;;  %v890_v29 = vadd.f32 %v2464_v28, %v879_v62  ;;  %v3290_v62 = vld [vmem:[#allocation8 + $0x270] sm:$0xff]   ;;  %v3292_v4 = vld [vmem:[#allocation8 + $0x280] sm:$0xff]  }
 0x5f2   :  { %3005 = vmatpush3.bf16.msra.mxu0 %v3292_v4  ;;  %v3296_v6 = vld [vmem:[#allocation8 + $0x290] sm:$0xff]  }
 0x5f3   :  { %v891_v31 = vadd.f32 %v2464_v28, %v882_v5  ;;  %v3294_v5 = vld [vmem:[#allocation8 + $0x288] sm:$0xff]   ;;  %3006 = vmatprep.subr.bf16.mxu0 %v3541_v0 }
 0x5f6   :  { %3007 = vmatpush3.bf16.msra.mxu0 %v3294_v5 }
 0x5f7   :  { %3008 = vmatprep.subr.bf16.mxu0 %v3541_v0 }
 0x5fa   :  { %3009 = vmatpush3.bf16.msra.mxu0 %v3296_v6 }
 0x5fb   :  { %3010 = vmatprep.subr.bf16.mxu0 %v3541_v0 }
 0x60e   :  { %v1006_v7 = vpop.f32.mrb[12].mxu1 }
 0x60f   :  { %v1096_v9 = vadd.f32 %v1095_v36, %v1006_v7  ;;  %v2922_v10 = vpop.f32.mrb[13].mxu1  ;;  %v1327_v36 = vpop.f32.mrb[20].mxu0  ;;  %v3298_v7 = vld [vmem:[#allocation8 + $0x298] sm:$0xff]  }
 0x610   :  { %v1009_v11 = vpop.f32.mrb[14].mxu1  ;;  %v2982_v37 = vpop.f32.mrb[21].mxu0  ;;  %3011 = vmatpush3.bf16.msra.mxu0 %v3298_v7 }
 0x611   :  { %v1107_v18 = vadd.f32 %v2481_v8, %v1096_v9  ;;  %v1099_v17 = vadd.f32 %v3821_v38, %v1009_v11  ;;  %v2923_v19 = vpop.f32.mrb[15].mxu1  ;;  %v1330_v38 = vpop.f32.mrb[22].mxu0  ;;  %3012 = vmatprep.subr.bf16.mxu0 %v3541_v0  ;;  %v3302_v9 = vld [vmem:[#allocation8 + $0x2a8] sm:$0xff]  }
 0x612   :  { %v2983_v39 = vpop.f32.mrb[23].mxu0 }
 0x613   :  { %v2482_v20 = vmul.f32 -1.442695, %v1107_v18  ;;  %v1108_v21 = vadd.f32 %v2481_v8, %v1099_v17  ;;  %v3300_v8 = vld [vmem:[#allocation8 + $0x2a0] sm:$0xff]  }
 0x614   :  { %3013 = vmatpush3.bf16.msra.mxu0 %v3300_v8 }
 0x615   :  { %3356 = vpow2.f32 %v2482_v20  ;;  %v2483_v22 = vmul.f32 -1.442695, %v1108_v21  ;;  %3014 = vmatprep.subr.bf16.mxu0 %v3541_v0 }
 0x617   :  { %3358 = vpow2.f32 %v2483_v22 }
 0x618   :  { %3015 = vmatpush3.bf16.msra.mxu0 %v3302_v9  ;;  %v3384_v9 = vld [vmem:[#allocation2] sm:$0xff] }
 0x619   :  { %3016 = vmatprep.subr.bf16.mxu0 %v3541_v0 }
 0x61f   :  { %v3357_v23 = vpop.eup %3356 }
 0x620   :  { %v1115_v24 = vadd.f32 1.0, %v3357_v23 }
 0x621   :  { %v3359_v43 = vpop.eup %3358 }
 0x622   :  { %3360 = vrcp.f32 %v1115_v24  ;;  %v1116_v25 = vadd.f32 1.0, %v3359_v43 }
 0x624   :  { %3362 = vrcp.f32 %v1116_v25 }
 0x62c   :  { %v3361_v30 = vpop.eup %3360 }
 0x62d   :  { %v3845_v32 = vmul.f32 %v3361_v30, %v890_v29 }
 0x62e   :  { %v3363_v33 = vpop.eup %3362 }
 0x62f   :  { %v3847_v34 = vmul.f32 %v3363_v33, %v891_v31  ;;  %v2501_v33 = vld [vmem:[#allocation10 + $0x6] ss:$0 sm:$0xff] }
 0x631   :  { %v1139_v35 = vpack.c.bf16 %v3847_v34, %v3845_v32 }
 0x633   :  { %2961 = vmatmul.mubr.bf16.vlgmr.msra.gmra.mrb[16].mxu1 %v1139_v35 }
 0x634   :  { %3000 = vmatprep.mubr.msk.bf16.mxu1 %vm3542_vm0, %v3541_v0  ;;  %2985 = vmatpush3.bf16.msra.mxu1 %v3284_v54  ;;  %v3301_v54 = vld [vmem:[#allocation8 + $0x2e0] sm:$0xff]  }
 0x635   :  { %2986 = vmatprep.subr.bf16.mxu1 %v3541_v0 }
 0x638   :  { %2987 = vmatpush3.bf16.msra.mxu1 %v3285_v55  ;;  %v3303_v55 = vld [vmem:[#allocation8 + $0x2e8] sm:$0xff]  }
 0x639   :  { %2988 = vmatprep.subr.bf16.mxu1 %v3541_v0 }
 0x63c   :  { %2989 = vmatpush3.bf16.msra.mxu1 %v3286_v58  ;;  %v3304_v58 = vld [vmem:[#allocation8 + $0x2b0] sm:$0xff]  }
 0x63d   :  { %2990 = vmatprep.subr.bf16.mxu1 %v3541_v0  ;;  %3017 = vmatpush3.bf16.msra.mxu0 %v3304_v58 }
 0x63e   :  { %3018 = vmatprep.subr.bf16.mxu0 %v3541_v0 }
 0x640   :  { %2991 = vmatpush3.bf16.msra.mxu1 %v3287_v59  ;;  %v3305_v59 = vld [vmem:[#allocation8 + $0x2f0] sm:$0xff]  }
 0x641   :  { %2992 = vmatprep.subr.bf16.mxu1 %v3541_v0 }
 0x644   :  { %2993 = vmatpush3.bf16.msra.mxu1 %v3288_v60  ;;  %v3306_v60 = vld [vmem:[#allocation8 + $0x2b8] sm:$0xff]  }
 0x645   :  { %2994 = vmatprep.subr.bf16.mxu1 %v3541_v0  ;;  %3019 = vmatpush3.bf16.msra.mxu0 %v3306_v60 }
 0x646   :  { %3044 = vmatprep.subr.bf16.mxu0 %v3541_v0 }
 0x648   :  { %2995 = vmatpush3.bf16.msra.mxu1 %v3289_v61  ;;  %v3307_v61 = vld [vmem:[#allocation8 + $0x2f8] sm:$0xff]  }
 0x649   :  { %2996 = vmatprep.subr.bf16.mxu1 %v3541_v0 }
 0x64c   :  { %2997 = vmatpush3.bf16.msra.mxu1 %v3290_v62  ;;  %v2503_v62 = vld [vmem:[#allocation10 + $0x8] ss:$0 sm:$0xff] }
 0x64d   :  { %2998 = vmatprep.subr.bf16.mxu1 %v3541_v0 }
 0x650   :  { %2999 = vmatpush3.bf16.msra.mxu1 %v3291_v63 }
 0x651   :  { %3024 = vmatprep.subr.bf16.mxu1 %v3541_v0 }
 0x706   :  { %v1238_v40 = vpop.f32.mrb[16].mxu1 }
 0x707   :  { %v1328_v42 = vadd.f32 %v1327_v36, %v1238_v40  ;;  %v2962_v44 = vpop.f32.mrb[17].mxu1 }
 0x708   :  { %v1241_v45 = vpop.f32.mrb[18].mxu1 }
 0x709   :  { %v3853_v46 = vadd.f32 %v2500_v41, %v1328_v42  ;;  %v1331_v47 = vadd.f32 %v1330_v38, %v1241_v45  ;;  %v2963_v48 = vpop.f32.mrb[19].mxu1  ;;  %v2502_v38 = vld [vmem:[#allocation10 + $0x7] ss:$0 sm:$0xff] }
 0x70a   :  { %v3293_v48 = vld [vmem:[#allocation8 + $0x2c0] sm:$0xff]  }
 0x70b   :  { %v3855_v49 = vadd.f32 %v2500_v41, %v1331_v47  ;;  %1341 = vadd.xlane.f32.xlu0 %v3853_v46  ;;  %v1347_v50 = vmul.f32 %v3853_v46, %v3853_v46 }
 0x70d   :  { %1343 = vadd.xlane.f32.xlu1 %v3855_v49  ;;  %v1348_v51 = vmul.f32 %v3855_v49, %v3855_v49 }
 0x70f   :  { %1349 = vadd.xlane.f32.xlu0 %v1347_v50 }
 0x711   :  { %1351 = vadd.xlane.f32.xlu1 %v1348_v51  ;;  %v3295_v51 = vld [vmem:[#allocation8 + $0x2c8] sm:$0xff]  }
 0x798   :  { %v1342_v10 = vpop.xlane.xlu0 %1341 }
 0x799   :  { %v1345_v11 = vmul.f32 0.03125, %v1342_v10 }
 0x79a   :  { %v1344_v18 = vpop.xlane.xlu1 %1343 }
 0x79b   :  { %v1346_v17 = vmul.f32 0.03125, %v1344_v18  ;;  %v1355_v20 = vmul.f32 %v1345_v11, %v1345_v11  ;;  %v1359_v30 = vsub.f32 %v3853_v46, %v1345_v11  ;;  %v3297_v46 = vld [vmem:[#allocation8 + $0x2d0] sm:$0xff]   ;;  %v3385_v11 = vld [vmem:[#allocation2 + $0x8] sm:$0xff] }
 0x79c   :  { %v1350_v19 = vpop.xlane.xlu0 %1349 }
 0x79d   :  { %v1353_v21 = vmul.f32 0.03125, %v1350_v19  ;;  %v1356_v23 = vmul.f32 %v1346_v17, %v1346_v17  ;;  %v1360_v35 = vsub.f32 %v3855_v49, %v1346_v17  ;;  %v3299_v49 = vld [vmem:[#allocation8 + $0x2d8] sm:$0xff]   ;;  %v3386_v19 = vld [vmem:[#allocation7] sm:$0xff]  }
 0x79e   :  { %v1352_v22 = vpop.xlane.xlu1 %1351 }
 0x79f   :  { %v1357_v24 = vsub.f32 %v1353_v21, %v1355_v20  ;;  %v1354_v43 = vmul.f32 0.03125, %v1352_v22  ;;  %v3387_v20 = vld [vmem:[#allocation7 + $0x8] sm:$0xff]   ;;  %v3388_v21 = vld [vmem:[#allocation7 + $0x10] sm:$0xff]   ;;  %v3390_v22 = vld [vmem:[#allocation7 + $0x20] sm:$0xff]  }
 0x7a1   :  { %v1361_v25 = vadd.f32 1e-05, %v1357_v24  ;;  %v1358_v28 = vsub.f32 %v1354_v43, %v1356_v23 }
 0x7a3   :  { %3364 = vrsqrt.f32 %v1361_v25  ;;  %v1362_v29 = vadd.f32 1e-05, %v1358_v28 }
 0x7a5   :  { %3366 = vrsqrt.f32 %v1362_v29 }
 0x7ad   :  { %v3365_v31 = vpop.eup %3364 }
 0x7ae   :  { %v1365_v36 = vmul.f32 %v3365_v31, %v1359_v30 }
 0x7af   :  { %v3367_v37 = vpop.eup %3366 }
 0x7b0   :  { %v1366_v39 = vmul.f32 %v3367_v37, %v1360_v35  ;;  %v1372_v40 = vmul.f32 %v2501_v33, %v1365_v36 }
 0x7b2   :  { %v1373_v41 = vmul.f32 %v2501_v33, %v1366_v39  ;;  %v1379_v42 = vadd.f32 %v2502_v38, %v1372_v40 }
 0x7b4   :  { %v1380_v44 = vadd.f32 %v2502_v38, %v1373_v41  ;;  %v1381_v45 = vmax.f32 %v1379_v42, 0.0 }
 0x7b6   :  { %v1382_v47 = vmax.f32 %v1380_v44, 0.0 }
 0x7b8   :  { %v1383_v50 = vpack.c.bf16 %v1382_v47, %v1381_v45 }
 0x7ba   :  { %3001 = vmatmul.mubr.bf16.vlgmr.msra.gmra.mrb[20].mxu1 %v1383_v50  ;;  %v3311_v50 = vld [vmem:[#allocation8 + $0x318] sm:$0xff]  }
 0x7bb   :  { %3025 = vmatpush3.bf16.msra.mxu1 %v3293_v48  ;;  %3040 = vmatprep.mubr.msk.bf16.mxu1 %vm3542_vm0, %v3541_v0  ;;  %v3308_v48 = vld [vmem:[#allocation8 + $0x300] sm:$0xff]  }
 0x7bc   :  { %3026 = vmatprep.subr.bf16.mxu1 %v3541_v0 }
 0x7bf   :  { %3027 = vmatpush3.bf16.msra.mxu1 %v3295_v51  ;;  %v3312_v51 = vld [vmem:[#allocation8 + $0x320] sm:$0xff]  }
 0x7c0   :  { %3028 = vmatprep.subr.bf16.mxu1 %v3541_v0 }
 0x7c3   :  { %3029 = vmatpush3.bf16.msra.mxu1 %v3297_v46  ;;  %v3313_v46 = vld [vmem:[#allocation8 + $0x328] sm:$0xff]  }
 0x7c4   :  { %3030 = vmatprep.subr.bf16.mxu1 %v3541_v0 }
 0x7c7   :  { %3031 = vmatpush3.bf16.msra.mxu1 %v3299_v49  ;;  %v3314_v49 = vld [vmem:[#allocation8 + $0x330] sm:$0xff]  }
 0x7c8   :  { %3032 = vmatprep.subr.bf16.mxu1 %v3541_v0 }
 0x7cb   :  { %3033 = vmatpush3.bf16.msra.mxu1 %v3301_v54 }
 0x7cc   :  { %3034 = vmatprep.subr.bf16.mxu1 %v3541_v0 }
 0x7cf   :  { %3035 = vmatpush3.bf16.msra.mxu1 %v3303_v55 }
 0x7d0   :  { %3036 = vmatprep.subr.bf16.mxu1 %v3541_v0 }
 0x7d3   :  { %3037 = vmatpush3.bf16.msra.mxu1 %v3305_v59 }
 0x7d4   :  { %3038 = vmatprep.subr.bf16.mxu1 %v3541_v0 }
 0x7d7   :  { %3039 = vmatpush3.bf16.msra.mxu1 %v3307_v61 }
 0x7d8   :  { %3064 = vmatprep.subr.bf16.mxu1 %v3541_v0 }
 0x88d   :  { %v1487_v63 = vpop.f32.mrb[20].mxu1 }
 0x88e   :  { %v1488_v4 = vadd.f32 %v2503_v62, %v1487_v63  ;;  %v3002_v5 = vpop.f32.mrb[21].mxu1  ;;  %v3315_v63 = vld [vmem:[#allocation8 + $0x338] sm:$0xff]  }
 0x88f   :  { %v1490_v6 = vpop.f32.mrb[22].mxu1  ;;  %v3333_v5 = vld [vmem:[#allocation8 + $0x388] sm:$0xff]  }
 0x890   :  { %v1491_v7 = vadd.f32 %v2503_v62, %v1490_v6  ;;  %v3003_v8 = vpop.f32.mrb[23].mxu1  ;;  %v1494_v10 = vadd.f32 %v3384_v9, %v1488_v4  ;;  %v3332_v4 = vld [vmem:[#allocation8 + $0x380] sm:$0xff]   ;;  %v3334_v6 = vld [vmem:[#allocation8 + $0x390] sm:$0xff]   ;;  %v3337_v9 = vld [vmem:[#allocation8 + $0x3a8] sm:$0xff]  }
 0x891   :  { %v3336_v8 = vld [vmem:[#allocation8 + $0x3a0] sm:$0xff]  }
 0x892   :  { %v1495_v18 = vadd.f32 %v3385_v11, %v1491_v7  ;;  %v3335_v7 = vld [vmem:[#allocation8 + $0x398] sm:$0xff]  }
 0x894   :  { %v1496_v17 = vpack.c.bf16 %v1495_v18, %v1494_v10  ;;  %v3338_v10 = vld [vmem:[#allocation8 + $0x3b0] sm:$0xff]  }
 0x896   :  { %3021 = vmatmul.mubr.bf16.vlgmr.msra.gmra.mrb[24].mxu0 %v1496_v17  ;;  %3041 = vmatmul.mubr.bf16.vlgmr.msra.gmra.mrb[24].mxu1 %v1496_v17 }
 0x897   :  { %3045 = vmatpush3.bf16.msra.mxu0 %v3386_v19  ;;  %3060 = vmatprep.mubr.msk.bf16.mxu0 %vm3542_vm0, %v3541_v0  ;;  %v3316_v19 = vld [vmem:[#allocation8 + $0x340] sm:$0xff]  }
 0x898   :  { %3046 = vmatprep.subr.bf16.mxu0 %v3541_v0  ;;  %3065 = vmatpush3.bf16.msra.mxu1 %v3731_v1  ;;  %v3389_v1 = vld [vmem:[#allocation7 + $0x18] sm:$0xff]  }
 0x899   :  { %3066 = vmatprep.subr.bf16.mxu1 %v3541_v0  ;;  %3080 = vmatprep.mubr.msk.bf16.mxu1 %vm3542_vm0, %v3541_v0 }
 0x89b   :  { %3047 = vmatpush3.bf16.msra.mxu0 %v3387_v20 }
 0x89c   :  { %3048 = vmatprep.subr.bf16.mxu0 %v3541_v0  ;;  %3067 = vmatpush3.bf16.msra.mxu1 %v3734_v2  ;;  %v3391_v2 = vld [vmem:[#allocation7 + $0x28] sm:$0xff]  }
 0x89d   :  { %3068 = vmatprep.subr.bf16.mxu1 %v3541_v0 }
 0x89f   :  { %3049 = vmatpush3.bf16.msra.mxu0 %v3388_v21 }
 0x8a0   :  { %3050 = vmatprep.subr.bf16.mxu0 %v3541_v0  ;;  %3069 = vmatpush3.bf16.msra.mxu1 %v3738_v3  ;;  %v2512_v3 = vld [vmem:[#allocation10 + $0x9] ss:$0 sm:$0xff] }
 0x8a1   :  { %3070 = vmatprep.subr.bf16.mxu1 %v3541_v0 }
 0x8a3   :  { %3051 = vmatpush3.bf16.msra.mxu0 %v3389_v1  ;;  %v3317_v1 = vld [vmem:[#allocation8 + $0x348] sm:$0xff]  }
 0x8a4   :  { %3052 = vmatprep.subr.bf16.mxu0 %v3541_v0  ;;  %3071 = vmatpush3.bf16.msra.mxu1 %v3743_v12 }
 0x8a5   :  { %3072 = vmatprep.subr.bf16.mxu1 %v3541_v0 }
 0x8a7   :  { %3053 = vmatpush3.bf16.msra.mxu0 %v3390_v22  ;;  %v3318_v22 = vld [vmem:[#allocation8 + $0x350] sm:$0xff]  }
 0x8a8   :  { %3054 = vmatprep.subr.bf16.mxu0 %v3541_v0  ;;  %3073 = vmatpush3.bf16.msra.mxu1 %v3747_v13  ;;  %v2521_v13 = vld [vmem:[#allocation10 + $0xa] ss:$0 sm:$0xff] }
 0x8a9   :  { %3074 = vmatprep.subr.bf16.mxu1 %v3541_v0 }
 0x8ab   :  { %3055 = vmatpush3.bf16.msra.mxu0 %v3391_v2  ;;  %v3319_v2 = vld [vmem:[#allocation8 + $0x358] sm:$0xff]  }
 0x8ac   :  { %3056 = vmatprep.subr.bf16.mxu0 %v3541_v0  ;;  %3075 = vmatpush3.bf16.msra.mxu1 %v3750_v14 }
 0x8ad   :  { %3076 = vmatprep.subr.bf16.mxu1 %v3541_v0 }
 0x8af   :  { %3057 = vmatpush3.bf16.msra.mxu0 %v3685_v26 }
 0x8b0   :  { %3058 = vmatprep.subr.bf16.mxu0 %v3541_v0  ;;  %3077 = vmatpush3.bf16.msra.mxu1 %v3754_v15 }
 0x8b1   :  { %3078 = vmatprep.subr.bf16.mxu1 %v3541_v0 }
 0x8b3   :  { %3059 = vmatpush3.bf16.msra.mxu0 %v3689_v27 }
 0x8b4   :  { %3079 = vmatpush3.bf16.msra.mxu1 %v3758_v16  ;;  %3084 = vmatprep.subr.bf16.mxu0 %v3541_v0 }
 0x8b5   :  { %3104 = vmatprep.subr.bf16.mxu1 %v3541_v0 }
 0x969   :  { %v1600_v12 = vpop.f32.mrb[24].mxu0  ;;  %v1710_v14 = vpop.f32.mrb[24].mxu1 }
 0x96a   :  { %v3022_v23 = vpop.f32.mrb[25].mxu0  ;;  %v3042_v26 = vpop.f32.mrb[25].mxu1  ;;  %v1601_v25 = vadd.f32 %v2512_v3, %v1600_v12  ;;  %v1711_v15 = vadd.f32 %v2521_v13, %v1710_v14  ;;  %v3321_v12 = vld [vmem:[#allocation8 + $0x368] sm:$0xff]   ;;  %v3323_v14 = vld [vmem:[#allocation8 + $0x378] sm:$0xff]  }
 0x96b   :  { %v1603_v24 = vpop.f32.mrb[26].mxu0  ;;  %v1713_v43 = vpop.f32.mrb[26].mxu1  ;;  %v3324_v23 = vld [vmem:[#allocation8 + $0x3c0] sm:$0xff]   ;;  %v3325_v26 = vld [vmem:[#allocation8 + $0x3c8] sm:$0xff]  }
 0x96c   :  { %v1604_v28 = vadd.f32 %v2512_v3, %v1603_v24  ;;  %v1714_v29 = vadd.f32 %v2521_v13, %v1713_v43  ;;  %v3023_v30 = vpop.f32.mrb[27].mxu0  ;;  %v3043_v27 = vpop.f32.mrb[27].mxu1  ;;  %v3320_v3 = vld [vmem:[#allocation8 + $0x360] sm:$0xff]   ;;  %v3322_v13 = vld [vmem:[#allocation8 + $0x370] sm:$0xff]   ;;  %v3327_v43 = vld [vmem:[#allocation8 + $0x3d8] sm:$0xff]  }
 0x96d   :  { %v3326_v24 = vld [vmem:[#allocation8 + $0x3d0] sm:$0xff]   ;;  %v3339_v30 = vld [vmem:[#allocation8 + $0x3b8] sm:$0xff]   ;;  %v2530_v27 = vld [vmem:[#allocation10 + $0xb] ss:$0 sm:$0xff] }
 0x96e   :  { %v3921_v31 = vpack.c.bf16 %v1604_v28, %v1601_v25  ;;  %v1717_v16 = vpack.c.bf16 %v1714_v29, %v1711_v15  ;;  %v3328_v25 = vld [vmem:[#allocation8 + $0x3e0] sm:$0xff]   ;;  %v3329_v15 = vld [vmem:[#allocation8 + $0x3e8] sm:$0xff]   ;;  %v3330_v28 = vld [vmem:[#allocation8 + $0x3f0] sm:$0xff]  }
 0x96f   :  { %v3331_v29 = vld [vmem:[#allocation8 + $0x3f8] sm:$0xff]  }
 0x970   :  { %3061 = vmatmul.mubr.bf16.vlgmr.msra.gmra.mrb[28].mxu0 %v1717_v16 }
 0x971   :  { %3100 = vmatprep.mubr.msk.bf16.mxu0 %vm3542_vm0, %v3541_v0  ;;  %3085 = vmatpush3.bf16.msra.mxu0 %v3308_v48 }
 0x972   :  { %3086 = vmatprep.subr.bf16.mxu0 %v3541_v0 }
 0x975   :  { %3087 = vmatpush3.bf16.msra.mxu0 %v3309_v56 }
 0x976   :  { %3088 = vmatprep.subr.bf16.mxu0 %v3541_v0 }
 0x979   :  { %3089 = vmatpush3.bf16.msra.mxu0 %v3310_v57 }
 0x97a   :  { %3090 = vmatprep.subr.bf16.mxu0 %v3541_v0 }
 0x97d   :  { %3091 = vmatpush3.bf16.msra.mxu0 %v3311_v50 }
 0x97e   :  { %3092 = vmatprep.subr.bf16.mxu0 %v3541_v0 }
 0x981   :  { %3093 = vmatpush3.bf16.msra.mxu0 %v3312_v51 }
 0x982   :  { %3094 = vmatprep.subr.bf16.mxu0 %v3541_v0 }
 0x985   :  { %3095 = vmatpush3.bf16.msra.mxu0 %v3313_v46 }
 0x986   :  { %3096 = vmatprep.subr.bf16.mxu0 %v3541_v0 }
 0x989   :  { %3097 = vmatpush3.bf16.msra.mxu0 %v3314_v49 }
 0x98a   :  { %3098 = vmatprep.subr.bf16.mxu0 %v3541_v0 }
 0x98d   :  { %3099 = vmatpush3.bf16.msra.mxu0 %v3315_v63  ;;  %v2572_v63 = vld [vmem:[#allocation10 + $0xd] ss:$0 sm:$0xff] }
 0x98e   :  { %3124 = vmatprep.subr.bf16.mxu0 %v3541_v0 }
 0xa43   :  { %v1752_v33 = vpop.f32.mrb[28].mxu0 }
 0xa44   :  { %v3062_v35 = vpop.f32.mrb[29].mxu0  ;;  %v1759_v36 = vsel %vm450_vm3, %v1752_v33, -1e+30 }
 0xa45   :  { %1761 = vmax.xlane.f32.xlu0 %v1759_v36  ;;  %v1755_v37 = vpop.f32.mrb[30].mxu0 }
 0xa46   :  { %v3063_v38 = vpop.f32.mrb[31].mxu0  ;;  %v1760_v39 = vsel %vm451_vm6, %v1755_v37, -1e+30 }
 0xa47   :  { %1763 = vmax.xlane.f32.xlu1 %v1760_v39 }
 0xad2   :  { %v1762_v40 = vpop.xlane.xlu0 %1761 }
 0xad3   :  { %v1765_v41 = vsub.f32 %v1759_v36, %v1762_v40 }
 0xad4   :  { %v1764_v42 = vpop.xlane.xlu1 %1763 }
 0xad5   :  { %v1767_v44 = vmul.f32 1.442695, %v1765_v41  ;;  %v1766_v45 = vsub.f32 %v1760_v39, %v1764_v42  ;;  %v3340_v39 = vld [vmem:[#allocation8 + $0x400] sm:$0xff]   ;;  %v3341_v41 = vld [vmem:[#allocation8 + $0x408] sm:$0xff]   ;;  %v3343_v42 = vld [vmem:[#allocation8 + $0x418] sm:$0xff]  }
 0xad7   :  { %3368 = vpow2.f32 %v1767_v44  ;;  %v1769_v52 = vmul.f32 1.442695, %v1766_v45  ;;  %v3344_v44 = vld [vmem:[#allocation8 + $0x420] sm:$0xff]   ;;  %v3345_v45 = vld [vmem:[#allocation8 + $0x428] sm:$0xff]  }
 0xad9   :  { %3370 = vpow2.f32 %v1769_v52  ;;  %v3346_v52 = vld [vmem:[#allocation8 + $0x430] sm:$0xff]  }
 0xae1   :  { %v3369_v53 = vpop.eup %3368 }
 0xae2   :  { %1771 = vadd.xlane.f32.xlu0 %v3369_v53 }
 0xae3   :  { %v3371_v47 = vpop.eup %3370 }
 0xae4   :  { %1773 = vadd.xlane.f32.xlu1 %v3371_v47 }
 0xb6f   :  { %v1772_v54 = vpop.xlane.xlu0 %1771 }
 0xb70   :  { %3372 = vrcp.f32 %v1772_v54 }
 0xb71   :  { %v1774_v55 = vpop.xlane.xlu1 %1773 }
 0xb72   :  { %3374 = vrcp.f32 %v1774_v55 }
 0xb7a   :  { %v3373_v58 = vpop.eup %3372 }
 0xb7b   :  { %v1777_v60 = vmul.f32 %v3373_v58, %v3369_v53 }
 0xb7c   :  { %v3375_v59 = vpop.eup %3374 }
 0xb7d   :  { %v1778_v61 = vmul.f32 %v3375_v59, %v3371_v47  ;;  %v3347_v47 = vld [vmem:[#allocation8 + $0x438] sm:$0xff]  }
 0xb7f   :  { %v1779_v62 = vpack.c.bf16 %v1778_v61, %v1777_v60 }
 0xb81   :  { %3081 = vmatmul.mubr.bf16.vlgmr.msra.gmra.mrb[28].mxu1 %v1779_v62 }
 0xb82   :  { %3120 = vmatprep.mubr.msk.bf16.mxu1 %vm3542_vm0, %v3541_v0  ;;  %3105 = vmatpush3.bf16.msra.mxu1 %v3332_v4 }
 0xb83   :  { %3106 = vmatprep.subr.bf16.mxu1 %v3541_v0 }
 0xb86   :  { %3107 = vmatpush3.bf16.msra.mxu1 %v3333_v5 }
 0xb87   :  { %3108 = vmatprep.subr.bf16.mxu1 %v3541_v0 }
 0xb8a   :  { %3109 = vmatpush3.bf16.msra.mxu1 %v3334_v6 }
 0xb8b   :  { %3110 = vmatprep.subr.bf16.mxu1 %v3541_v0 }
 0xb8e   :  { %3111 = vmatpush3.bf16.msra.mxu1 %v3335_v7 }
 0xb8f   :  { %3112 = vmatprep.subr.bf16.mxu1 %v3541_v0 }
 0xb92   :  { %3113 = vmatpush3.bf16.msra.mxu1 %v3336_v8 }
 0xb93   :  { %3114 = vmatprep.subr.bf16.mxu1 %v3541_v0 }
 0xb96   :  { %3115 = vmatpush3.bf16.msra.mxu1 %v3337_v9 }
 0xb97   :  { %3116 = vmatprep.subr.bf16.mxu1 %v3541_v0 }
 0xb9a   :  { %3117 = vmatpush3.bf16.msra.mxu1 %v3338_v10 }
 0xb9b   :  { %3118 = vmatprep.subr.bf16.mxu1 %v3541_v0 }
 0xb9e   :  { %3119 = vmatpush3.bf16.msra.mxu1 %v3339_v30 }
 0xb9f   :  { %3144 = vmatprep.subr.bf16.mxu1 %v3541_v0 }
 0xc54   :  { %v1814_v11 = vpop.f32.mrb[28].mxu1 }
 0xc55   :  { %v3082_v18 = vpop.f32.mrb[29].mxu1 }
 0xc56   :  { %v1817_v17 = vpop.f32.mrb[30].mxu1 }
 0xc57   :  { %v1821_v20 = vpack.c.bf16 %v1817_v17, %v1814_v11  ;;  %v3083_v21 = vpop.f32.mrb[31].mxu1 }
 0xc58   :  { %v2555_v21 = vld [vmem:[#allocation10 + $0xc] ss:$0 sm:$0xff] }
 0xc59   :  { %3101 = vmatmul.mubr.bf16.vlgmr.msra.gmra.mrb[32].mxu0 %v1821_v20 }
 0xc5a   :  { %3125 = vmatpush3.bf16.msra.mxu0 %v3316_v19  ;;  %3140 = vmatprep.mubr.msk.bf16.mxu0 %vm3542_vm0, %v3541_v0 }
 0xc5b   :  { %3126 = vmatprep.subr.bf16.mxu0 %v3541_v0 }
 0xc5e   :  { %3127 = vmatpush3.bf16.msra.mxu0 %v3317_v1 }
 0xc5f   :  { %3128 = vmatprep.subr.bf16.mxu0 %v3541_v0 }
 0xc62   :  { %3129 = vmatpush3.bf16.msra.mxu0 %v3318_v22 }
 0xc63   :  { %3130 = vmatprep.subr.bf16.mxu0 %v3541_v0 }
 0xc66   :  { %3131 = vmatpush3.bf16.msra.mxu0 %v3319_v2 }
 0xc67   :  { %3132 = vmatprep.subr.bf16.mxu0 %v3541_v0 }
 0xc6a   :  { %3133 = vmatpush3.bf16.msra.mxu0 %v3320_v3 }
 0xc6b   :  { %3134 = vmatprep.subr.bf16.mxu0 %v3541_v0 }
 0xc6e   :  { %3135 = vmatpush3.bf16.msra.mxu0 %v3321_v12 }
 0xc6f   :  { %3136 = vmatprep.subr.bf16.mxu0 %v3541_v0 }
 0xc72   :  { %3137 = vmatpush3.bf16.msra.mxu0 %v3322_v13 }
 0xc73   :  { %3138 = vmatprep.subr.bf16.mxu0 %v3541_v0 }
 0xc76   :  { %3139 = vmatpush3.bf16.msra.mxu0 %v3323_v14 }
 0xc77   :  { %3164 = vmatprep.subr.bf16.mxu0 %v3541_v0 }
 0xc79   :  { %3141 = vmatmul.mubr.bf16.vlgmr.msra.gmra.mrb[36].mxu0 %v3921_v31 }
 0xc7a   :  { %3165 = vmatpush3.bf16.msra.mxu0 %v3324_v23  ;;  %3180 = vmatprep.mubr.msk.bf16.mxu0 %vm3542_vm0, %v3541_v0 }
 0xc7b   :  { %3166 = vmatprep.subr.bf16.mxu0 %v3541_v0 }
 0xc7e   :  { %3167 = vmatpush3.bf16.msra.mxu0 %v3325_v26 }
 0xc7f   :  { %3168 = vmatprep.subr.bf16.mxu0 %v3541_v0 }
 0xc82   :  { %3169 = vmatpush3.bf16.msra.mxu0 %v3326_v24 }
 0xc83   :  { %3170 = vmatprep.subr.bf16.mxu0 %v3541_v0 }
 0xc86   :  { %3171 = vmatpush3.bf16.msra.mxu0 %v3327_v43 }
 0xc87   :  { %3172 = vmatprep.subr.bf16.mxu0 %v3541_v0 }
 0xc8a   :  { %3173 = vmatpush3.bf16.msra.mxu0 %v3328_v25 }
 0xc8b   :  { %3174 = vmatprep.subr.bf16.mxu0 %v3541_v0 }
 0xc8e   :  { %3175 = vmatpush3.bf16.msra.mxu0 %v3329_v15 }
 0xc8f   :  { %3176 = vmatprep.subr.bf16.mxu0 %v3541_v0 }
 0xc92   :  { %3177 = vmatpush3.bf16.msra.mxu0 %v3330_v28 }
 0xc93   :  { %3178 = vmatprep.subr.bf16.mxu0 %v3541_v0 }
 0xc96   :  { %3179 = vmatpush3.bf16.msra.mxu0 %v3331_v29 }
 0xc99   :  { %3181 = vmatmul.mubr.bf16.vlgmr.msra.gmra.mrb[40].mxu0 %v3921_v31  ;;  %v3342_v31 = vld [vmem:[#allocation8 + $0x410] sm:$0xff]  }
 0xd2c   :  { %v1925_v16 = vpop.f32.mrb[32].mxu0 }
 0xd2d   :  { %v3102_v33 = vpop.f32.mrb[33].mxu0  ;;  %v1926_v36 = vadd.f32 %v2530_v27, %v1925_v16 }
 0xd2e   :  { %v1928_v35 = vpop.f32.mrb[34].mxu0 }
 0xd2f   :  { %v1929_v37 = vadd.f32 %v2530_v27, %v1928_v35  ;;  %v3103_v38 = vpop.f32.mrb[35].mxu0 }
 0xd31   :  { %v1949_v40 = vpack.c.bf16 %v1929_v37, %v1926_v36 }
 0xd33   :  { %3121 = vmatmul.mubr.bf16.vlgmr.msra.gmra.mrb[32].mxu1 %v1949_v40 }
 0xd34   :  { %3145 = vmatpush3.bf16.msra.mxu1 %v3340_v39  ;;  %3160 = vmatprep.mubr.msk.bf16.mxu1 %vm3542_vm0, %v3541_v0 }
 0xd35   :  { %3146 = vmatprep.subr.bf16.mxu1 %v3541_v0 }
 0xd38   :  { %3147 = vmatpush3.bf16.msra.mxu1 %v3341_v41 }
 0xd39   :  { %3148 = vmatprep.subr.bf16.mxu1 %v3541_v0 }
 0xd3c   :  { %3149 = vmatpush3.bf16.msra.mxu1 %v3342_v31 }
 0xd3d   :  { %3150 = vmatprep.subr.bf16.mxu1 %v3541_v0 }
 0xd40   :  { %3151 = vmatpush3.bf16.msra.mxu1 %v3343_v42 }
 0xd41   :  { %3152 = vmatprep.subr.bf16.mxu1 %v3541_v0 }
 0xd44   :  { %3153 = vmatpush3.bf16.msra.mxu1 %v3344_v44 }
 0xd45   :  { %3154 = vmatprep.subr.bf16.mxu1 %v3541_v0 }
 0xd48   :  { %3155 = vmatpush3.bf16.msra.mxu1 %v3345_v45 }
 0xd49   :  { %3156 = vmatprep.subr.bf16.mxu1 %v3541_v0 }
 0xd4c   :  { %v2137_v53 = vpop.f32.mrb[36].mxu0  ;;  %3157 = vmatpush3.bf16.msra.mxu1 %v3346_v52 }
 0xd4d   :  { %v3142_v48 = vpop.f32.mrb[37].mxu0  ;;  %3158 = vmatprep.subr.bf16.mxu1 %v3541_v0 }
 0xd4e   :  { %v2140_v56 = vpop.f32.mrb[38].mxu0 }
 0xd4f   :  { %v3143_v57 = vpop.f32.mrb[39].mxu0 }
 0xd50   :  { %3159 = vmatpush3.bf16.msra.mxu1 %v3347_v47 }
 0xd53   :  { %3161 = vmatmul.mubr.bf16.vlgmr.msra.gmra.mrb[36].mxu1 %v1949_v40 }
 0xd6c   :  { %v2354_v50 = vpop.f32.mrb[40].mxu0 }
 0xd6d   :  { %v3182_v51 = vpop.f32.mrb[41].mxu0 }
 0xd6e   :  { %v2357_v46 = vpop.f32.mrb[42].mxu0 }
 0xd6f   :  { %v3183_v49 = vpop.f32.mrb[43].mxu0 }
 0xe06   :  { %v2048_v54 = vpop.f32.mrb[32].mxu1 }
 0xe07   :  { %v2138_v55 = vadd.f32 %v2137_v53, %v2048_v54  ;;  %v3122_v58 = vpop.f32.mrb[33].mxu1 }
 0xe08   :  { %v2051_v59 = vpop.f32.mrb[34].mxu1 }
 0xe09   :  { %v2141_v60 = vadd.f32 %v2140_v56, %v2051_v59  ;;  %v3123_v61 = vpop.f32.mrb[35].mxu1  ;;  %v2149_v1 = vadd.f32 %v2555_v21, %v2138_v55 }
 0xe0b   :  { %v2150_v2 = vadd.f32 %v2555_v21, %v2141_v60 }
 0xe26   :  { %v2265_v62 = vpop.f32.mrb[36].mxu1 }
 0xe27   :  { %v2355_v4 = vadd.f32 %v2354_v50, %v2265_v62  ;;  %v3162_v5 = vpop.f32.mrb[37].mxu1 }
 0xe28   :  { %v2268_v6 = vpop.f32.mrb[38].mxu1 }
 0xe29   :  { %v2366_v0 = vadd.f32 %v2572_v63, %v2355_v4  ;;  %v2358_v7 = vadd.f32 %v2357_v46, %v2268_v6  ;;  %v3163_v8 = vpop.f32.mrb[39].mxu1 }
 0xe2b   :  { %v2573_v9 = vmul.f32 -1.442695, %v2366_v0  ;;  %v2367_v10 = vadd.f32 %v2572_v63, %v2358_v7 }
 0xe2d   :  { %3376 = vpow2.f32 %v2573_v9  ;;  %v2574_v11 = vmul.f32 -1.442695, %v2367_v10 }
 0xe2f   :  { %3378 = vpow2.f32 %v2574_v11 }
 0xe37   :  { %v3377_v18 = vpop.eup %3376 }
 0xe38   :  { %v2374_v17 = vadd.f32 1.0, %v3377_v18 }
 0xe39   :  { %v3379_v19 = vpop.eup %3378 }
 0xe3a   :  { %3380 = vrcp.f32 %v2374_v17  ;;  %v2375_v20 = vadd.f32 1.0, %v3379_v19 }
 0xe3c   :  { %3382 = vrcp.f32 %v2375_v20 }
 0xe44   :  { %v3381_v22 = vpop.eup %3380 }
 0xe45   :  { %v2380_v3 = vmul.f32 %v3381_v22, %v2149_v1 }
 0xe46   :  { %v3383_v12 = vpop.eup %3382 }
 0xe47   :  { %v2381_v13 = vmul.f32 %v3383_v12, %v2150_v2  ;;  %v2382_v14 = vadd.f32 %v2380_v3, %v3845_v32 }
 0xe49   :  { %v2383_v23 = vadd.f32 %v2381_v13, %v3847_v34  ;;  %2384 = vst [vmem:[#allocation11] sm:$0xff] %v2382_v14 }
 0xe4b   :  { %2385 = vst [vmem:[#allocation11 + $0x8] sm:$0xff] %v2383_v23 }
 0xe4c   :  { %3513 = shalt.err (!%p3510_p2)
}
 0xe4d   :  { %s3514_s9 = scalar_lea.hbm %s4005_s5, 256 }
 0xe4e   :  { %p3515_p3 = scmp.ne.s32.totalorder %s4005_s5, %s3514_s9  ;;  %p3518_p4 = scmp.lt.u32.totalorder %s3514_s9, %s4005_s5 }
 0xe50   :  { %p3520_p5 = pnand %p3518_p4, %p3515_p3 }
 0xe52   :  { %3523 = shalt.err (!%p3520_p5)
}
 0xe53   :  { %2397 = dma.vmem_to_hbm [thread:$0]  %s2392_s29, 256, %s4005_s5, [#allocation4], %s3537_s3, %s3537_s3, %s3538_s30  }
 0xe54   :  { %3530 = dma.done.wait [#allocation4], 256  }
 0xe55   :  { %3531 = vsyncadd [#allocation4], 4294967040 }
 0xe56   :  { %2401 = vsyncpa [#allocation3], 1 }
 0xe57   :  { %2402 = vsyncpa [#allocation6], 1 }
 0xe58   :  { %2403 = vsyncpa [#allocation9], 1 }
 0xe59   :  { %2404 = vsyncpa [#allocation4], 1 }

</bundles_post_ra>
